<compile_context>
chip_gen: v7x
topology: tpu7x:2x2x1
jax: 0.10.0
libtpu: 0.0.40
codegen_flags: <defaults>
</compile_context>

<pallas_src>
import functools

import numpy as np
import jax
import jax.numpy as jnp
from jax.experimental import pallas as pl
from jax.experimental.pallas import tpu as pltpu


def _round_up(x, m):
    return ((x + m - 1) // m) * m


# ---------------------------------------------------------------------------
# Kernel 1a: single-K-step conv matmul (+ optional bias) + per-block BN stats
# ---------------------------------------------------------------------------
def _conv_stats_kernel(p_ref, w_ref, b_ref, y_ref, s_ref, ss_ref, *, add_bias):
    y = jnp.dot(p_ref[...], w_ref[...], preferred_element_type=jnp.float32)
    if add_bias:
        y = y + b_ref[...]                       # (TM, TN) + (1, TN), f32
    y_ref[...] = y.astype(y_ref.dtype)
    # Per-(m,n)-block partial statistics; reduced outside in plain JAX so the
    # m / n grid axes stay "parallel" (no cross-step accumulation).
    s_ref[...] = jnp.sum(y, axis=0, keepdims=True)[None]
    ss_ref[...] = jnp.sum(y * y, axis=0, keepdims=True)[None]


# ---------------------------------------------------------------------------
# Kernel 1b: multi-K-step variant with an f32 VMEM accumulator
# ---------------------------------------------------------------------------
def _conv_stats_acc_kernel(p_ref, w_ref, b_ref, y_ref, s_ref, ss_ref, acc_ref,
                           *, add_bias):
    k = pl.program_id(2)

    @pl.when(k == 0)
    def _():
        acc_ref[...] = jnp.zeros_like(acc_ref)

    acc_ref[...] += jnp.dot(p_ref[...], w_ref[...],
                            preferred_element_type=jnp.float32)

    @pl.when(k == pl.num_programs(2) - 1)
    def _():
        y = acc_ref[...]
        if add_bias:
            y = y + b_ref[...]
        y_ref[...] = y.astype(y_ref.dtype)
        s_ref[...] = jnp.sum(y, axis=0, keepdims=True)[None]
        ss_ref[...] = jnp.sum(y * y, axis=0, keepdims=True)[None]


# ---------------------------------------------------------------------------
# Kernel 2: fused affine BatchNorm + optional ReLU (lane-dense blocks)
# ---------------------------------------------------------------------------
def _bn_act_kernel(y_ref, scale_ref, shift_ref, o_ref, *, apply_relu):
    y = y_ref[...].astype(jnp.float32) * scale_ref[...] + shift_ref[...]
    if apply_relu:
        y = jnp.maximum(y, 0.0)
    o_ref[...] = y.astype(o_ref.dtype)


# ---------------------------------------------------------------------------
# Module
# ---------------------------------------------------------------------------
class Unit3DPallas:
    """JAX/Pallas re-implementation of pytorch_i3d.Unit3D forward semantics."""

    def __init__(self, in_channels, output_channels, kernel_shape=(1, 1, 1),
                 stride=(1, 1, 1), use_batch_norm=True, use_bias=False,
                 use_activation=True, key=jax.random.PRNGKey(0)):
        self._in_ch = in_channels
        self._out_ch = output_channels
        self._kernel_shape = tuple(kernel_shape)
        self._stride = tuple(stride)
        self._use_bn = use_batch_norm
        self._use_bias = use_bias
        self._use_act = use_activation
        self._eps = 1e-3

        kt, kh, kw = self._kernel_shape
        fan_in = in_channels * kt * kh * kw
        k_w, k_b = jax.random.split(key)
        self.weight = (jax.random.normal(
            k_w, (output_channels, in_channels, kt, kh, kw), jnp.float32)
            * np.sqrt(2.0 / fan_in))
        if use_bias:
            self.bias = jax.random.normal(k_b, (output_channels,), jnp.float32) * 0.1
        else:
            self.bias = jnp.zeros((output_channels,), jnp.float32)
        # BatchNorm affine params (PyTorch defaults: gamma=1, beta=0)
        self.gamma = jnp.ones((output_channels,), jnp.float32)
        self.beta = jnp.zeros((output_channels,), jnp.float32)

    # identical to the PyTorch compute_pad
    def _compute_pad(self, dim, s):
        if s % self._stride[dim] == 0:
            return max(self._kernel_shape[dim] - self._stride[dim], 0)
        return max(self._kernel_shape[dim] - s % self._stride[dim], 0)

    def __call__(self, x):
        n, c, t, h, w = x.shape
        kt, kh, kw = self._kernel_shape
        st, sh, sw = self._stride
        out_t = -(-t // st)
        out_h = -(-h // sh)
        out_w = -(-w // sw)

        pad_t = self._compute_pad(0, t)
        pad_h = self._compute_pad(1, h)
        pad_w = self._compute_pad(2, w)

        # --- one NCDHW -> NDHWC pass, SAME-style pad, bf16 MXU input -------
        x_cl = jnp.transpose(x, (0, 2, 3, 4, 1))
        x_cl = jnp.pad(x_cl, ((0, 0),
                              (pad_t // 2, pad_t - pad_t // 2),
                              (pad_h // 2, pad_h - pad_h // 2),
                              (pad_w // 2, pad_w - pad_w // 2),
                              (0, 0))).astype(jnp.bfloat16)

        # --- tap slices (views) of the channel-last input ------------------
        # 1x1x1 convs: a single (possibly strided) view, no im2col blow-up.
        # k>1 convs: one bf16 concatenate, already in matmul layout.
        taps = []
        for dt in range(kt):
            for dh in range(kh):
                for dw in range(kw):
                    taps.append(x_cl[:, dt:dt + st * out_t:st,
                                     dh:dh + sh * out_h:sh,
                                     dw:dw + sw * out_w:sw, :])
        patches = taps[0] if len(taps) == 1 else jnp.concatenate(taps, axis=-1)

        M = n * out_t * out_h * out_w
        K = c * kt * kh * kw
        patches = patches.reshape(M, K)

        # weight (C_out, C_in, kt, kh, kw) -> (kt, kh, kw, C_in, C_out) -> (K, C_out)
        # so the K ordering (tap, ci) matches the tap-concatenated patches.
        w2 = jnp.transpose(self.weight, (2, 3, 4, 1, 0)).reshape(K, self._out_ch)
        w2 = w2.astype(jnp.bfloat16)

        # --- tiling: lane-dense, VMEM-bounded, megacore-friendly -----------
        TM = min(1024, _round_up(M, 8))
        TK = min(512, _round_up(K, 128))
        TN = min(512, _round_up(self._out_ch, 128))
        N_pad = _round_up(self._out_ch, TN)
        K_pad = _round_up(K, TK)
        gn, gk = N_pad // TN, K_pad // TK
        M_pad = _round_up(M, TM)
        gm = M_pad // TM
        # Ensure >=2 blocks on the parallel axes for v7x's two TensorCores.
        if gm * gn < 2 and TM >= 16:
            TM = _round_up((TM + 1) // 2, 8)
            M_pad = _round_up(M, TM)
            gm = M_pad // TM

        patches = jnp.pad(patches, ((0, M_pad - M), (0, K_pad - K)))
        w2 = jnp.pad(w2, ((0, K_pad - K), (0, N_pad - self._out_ch)))

        # Bias before BatchNorm is a mathematical no-op -> drop it (and with
        # it the padded-row stat correction) whenever BN is on.
        add_bias = bool(self._use_bias) and not self._use_bn
        bias_row = jnp.pad(self.bias, (0, N_pad - self._out_ch)).reshape(1, N_pad)
        bias_row = bias_row.astype(jnp.float32)

        fuse2 = self._use_bn or self._use_act
        y_dtype = jnp.bfloat16 if fuse2 else jnp.float32
        y_isize = jnp.dtype(y_dtype).itemsize

        # explicit VMEM budget: double-buffered ins/outs (+ f32 acc if gk>1)
        acc_bytes = TM * TN * 4 if gk > 1 else 0
        vmem_bytes = (2 * (TM * TK * 2 + TK * TN * 2 + TN * 4)
                      + 2 * (TM * TN * y_isize + 2 * TN * 4) + acc_bytes)
        vmem_limit = int(min(max(2 * vmem_bytes, 32 << 20), 48 << 20))

        # --- kernel 1: conv matmul (+bias) + per-block BN stats -------------
        if gk == 1:
            kernel1 = functools.partial(_conv_stats_kernel, add_bias=add_bias)
            grid = (gm, gn)
            in_specs = [
                pl.BlockSpec((TM, TK), lambda i, j: (i, 0)),
                pl.BlockSpec((TK, TN), lambda i, j: (0, j)),
                pl.BlockSpec((1, TN), lambda i, j: (0, j)),
            ]
            out_specs = [
                pl.BlockSpec((TM, TN), lambda i, j: (i, j)),
                pl.BlockSpec((1, 1, TN), lambda i, j: (i, 0, j)),
                pl.BlockSpec((1, 1, TN), lambda i, j: (i, 0, j)),
            ]
            scratch = []
            dim_sem = ("parallel", "parallel")
        else:
            kernel1 = functools.partial(_conv_stats_acc_kernel, add_bias=add_bias)
            grid = (gm, gn, gk)
            in_specs = [
                pl.BlockSpec((TM, TK), lambda i, j, k: (i, k)),
                pl.BlockSpec((TK, TN), lambda i, j, k: (k, j)),
                pl.BlockSpec((1, TN), lambda i, j, k: (0, j)),
            ]
            out_specs = [
                pl.BlockSpec((TM, TN), lambda i, j, k: (i, j)),
                pl.BlockSpec((1, 1, TN), lambda i, j, k: (i, 0, j)),
                pl.BlockSpec((1, 1, TN), lambda i, j, k: (i, 0, j)),
            ]
            scratch = [pltpu.VMEM((TM, TN), jnp.float32)]
            dim_sem = ("parallel", "parallel", "arbitrary")

        conv_out, part_sum, part_sumsq = pl.pallas_call(
            kernel1,
            out_shape=(
                jax.ShapeDtypeStruct((M_pad, N_pad), y_dtype),
                jax.ShapeDtypeStruct((gm, 1, N_pad), jnp.float32),
                jax.ShapeDtypeStruct((gm, 1, N_pad), jnp.float32),
            ),
            grid_spec=pltpu.PrefetchScalarGridSpec(
                num_scalar_prefetch=0, grid=grid,
                in_specs=in_specs, out_specs=out_specs,
                scratch_shapes=scratch),
            compiler_params=pltpu.CompilerParams(
                dimension_semantics=dim_sem, vmem_limit_bytes=vmem_limit),
        )(patches, w2, bias_row)

        # --- BN (training-mode batch statistics) scale/shift ----------------
        if self._use_bn:
            # Padded M rows contribute exactly zero to the partial sums
            # (zero bf16 patches x weights, no bias under BN).
            ch_sum = jnp.sum(part_sum[:, 0, :], axis=0)
            ch_sumsq = jnp.sum(part_sumsq[:, 0, :], axis=0)
            mean = ch_sum / M
            # E[y^2] - mean^2 in f32; clamp guards tiny negative values.
            var = jnp.maximum(ch_sumsq / M - mean * mean, 0.0)
            gamma = jnp.pad(self.gamma, (0, N_pad - self._out_ch))
            beta = jnp.pad(self.beta, (0, N_pad - self._out_ch))
            inv_std = jax.lax.rsqrt(var + self._eps)
            scale = (gamma * inv_std).reshape(1, N_pad)
            shift = (beta - mean * gamma * inv_std).reshape(1, N_pad)
        else:
            scale = jnp.ones((1, N_pad), jnp.float32)
            shift = jnp.zeros((1, N_pad), jnp.float32)

        # --- kernel 2: fused BN + ReLU over lane-dense (TM, N_pad) blocks ---
        if fuse2:
            TM2 = TM
            ws2 = 2 * (TM2 * N_pad * y_isize + 2 * N_pad * 4 + TM2 * N_pad * 4)
            vmem_limit2 = int(min(max(2 * ws2, 32 << 20), 48 << 20))
            out_flat = pl.pallas_call(
                functools.partial(_bn_act_kernel, apply_relu=self._use_act),
                out_shape=jax.ShapeDtypeStruct((M_pad, N_pad), jnp.float32),
                grid_spec=pltpu.PrefetchScalarGridSpec(
                    num_scalar_prefetch=0, grid=(M_pad // TM2,),
                    in_specs=[
                        pl.BlockSpec((TM2, N_pad), lambda i: (i, 0)),
                        pl.BlockSpec((1, N_pad), lambda i: (0, 0)),
                        pl.BlockSpec((1, N_pad), lambda i: (0, 0)),
                    ],
                    out_specs=pl.BlockSpec((TM2, N_pad), lambda i: (i, 0)),
                ),
                compiler_params=pltpu.CompilerParams(
                    dimension_semantics=("parallel",),
                    vmem_limit_bytes=vmem_limit2),
            )(conv_out, scale, shift)
        else:
            out_flat = conv_out          # already f32 in this configuration

        out = out_flat[:M, :self._out_ch].reshape(
            n, out_t, out_h, out_w, self._out_ch)
        # TODO(synk): keep NDHWC between layers to remove this transpose.
        return jnp.transpose(out, (0, 4, 1, 2, 3)).astype(jnp.float32)  # NCDHW


# ---------------------------------------------------------------------------
# Pure-JAX reference (for correctness check only)
# ---------------------------------------------------------------------------
def unit3d_reference(x, mod: Unit3DPallas):
    n, c, t, h, w = x.shape
    st, sh, sw = mod._stride
    pad_t = mod._compute_pad(0, t)
    pad_h = mod._compute_pad(1, h)
    pad_w = mod._compute_pad(2, w)
    x = jnp.pad(x, ((0, 0), (0, 0),
                    (pad_t // 2, pad_t - pad_t // 2),
                    (pad_h // 2, pad_h - pad_h // 2),
                    (pad_w // 2, pad_w - pad_w // 2)))
    y = jax.lax.conv_general_dilated(
        x, mod.weight, window_strides=(st, sh, sw), padding="VALID",
        dimension_numbers=("NCDHW", "OIDHW", "NCDHW"))
    if mod._use_bias:
        y = y + mod.bias.reshape(1, -1, 1, 1, 1)
    if mod._use_bn:
        mean = jnp.mean(y, axis=(0, 2, 3, 4), keepdims=True)
        var = jnp.mean((y - mean) ** 2, axis=(0, 2, 3, 4), keepdims=True)
        y = (y - mean) / jnp.sqrt(var + mod._eps)
        y = y * mod.gamma.reshape(1, -1, 1, 1, 1) + mod.beta.reshape(1, -1, 1, 1, 1)
    if mod._use_act:
        y = jnp.maximum(y, 0.0)
    return y


def _run_and_check(module, x, expected_shape):
    fwd = jax.jit(lambda v: module(v))
    out = jax.block_until_ready(fwd(x))
    ref = jax.block_until_ready(unit3d_reference(x, module))
    # bf16 MXU inputs / bf16 conv intermediate (f32 accumulation & stats)
    # -> slightly looser tolerance than pure f32.
    np.testing.assert_allclose(np.asarray(out), np.asarray(ref),
                               rtol=2e-2, atol=2e-2)
    assert out.shape == expected_shape, (out.shape, expected_shape)


if __name__ == "__main__":
    key = jax.random.PRNGKey(0)
    k_a, k_b, k_c, k_ma, k_mb, k_mc = jax.random.split(key, 6)

    # A) 3x3x3 conv, stride 1, BN + ReLU (single K step path).
    x_a = jax.random.normal(k_a, (2, 4, 8, 8, 8), jnp.float32)
    mod_a = Unit3DPallas(in_channels=4, output_channels=8,
                         kernel_shape=(3, 3, 3), stride=(1, 1, 1),
                         use_batch_norm=True, use_bias=False,
                         use_activation=True, key=k_ma)
    _run_and_check(mod_a, x_a, (2, 8, 8, 8, 8))

    # B) 3x3x3 conv, stride 2, BN + ReLU (multi-K accumulator path).
    x_b = jax.random.normal(k_b, (2, 24, 8, 8, 8), jnp.float32)
    mod_b = Unit3DPallas(in_channels=24, output_channels=16,
                         kernel_shape=(3, 3, 3), stride=(2, 2, 2),
                         use_batch_norm=True, use_bias=False,
                         use_activation=True, key=k_mb)
    _run_and_check(mod_b, x_b, (2, 16, 4, 4, 4))

    # C) 1x1x1 pointwise conv, bias + ReLU, no BN (fast path, bias path).
    x_c = jax.random.normal(k_c, (2, 32, 8, 8, 8), jnp.float32)
    mod_c = Unit3DPallas(in_channels=32, output_channels=64,
                         kernel_shape=(1, 1, 1), stride=(1, 1, 1),
                         use_batch_norm=False, use_bias=True,
                         use_activation=True, key=k_mc)
    _run_and_check(mod_c, x_c, (2, 64, 8, 8, 8))

    print("KERNEL_OK")
</pallas_src>

<mosaic_0001>
module attributes {stable_mosaic.version = 11 : i64} {
  func.func @_conv_stats_kernel(%arg0: i32, %arg1: i32, %arg2: memref<512x128xbf16, #tpu.memory_space<vmem>>, %arg3: memref<128x128xbf16, #tpu.memory_space<vmem>>, %arg4: memref<1x128xf32, #tpu.memory_space<vmem>>, %arg5: memref<512x128xbf16, #tpu.memory_space<vmem>>, %arg6: memref<1x1x128xf32, #tpu.memory_space<vmem>>, %arg7: memref<1x1x128xf32, #tpu.memory_space<vmem>>) attributes {dimension_semantics = [#tpu.dimension_semantics<parallel>, #tpu.dimension_semantics<parallel>], iteration_bounds = array<i64: 2, 1>, scalar_prefetch = 0 : i64, scratch_operands = 0 : i64, tpu.core_type = #tpu.core_type<tc>, window_params = [{transform_indices = @transform_0, window_bounds = array<i64: 512, 128>}, {transform_indices = @transform_1, window_bounds = array<i64: 128, 128>}, {transform_indices = @transform_2, window_bounds = array<i64: 1, 128>}, {transform_indices = @transform_3, window_bounds = array<i64: 512, 128>}, {transform_indices = @transform_4, window_bounds = array<i64: 1, 1, 128>}, {transform_indices = @transform_5, window_bounds = array<i64: 1, 1, 128>}]} {
    %c0 = arith.constant 0 : index
    %c0_0 = arith.constant 0 : index
    %0 = vector.load %arg2[%c0, %c0_0] : memref<512x128xbf16, #tpu.memory_space<vmem>>, vector<512x128xbf16>
    %c0_1 = arith.constant 0 : index
    %c0_2 = arith.constant 0 : index
    %1 = vector.load %arg3[%c0_1, %c0_2] : memref<128x128xbf16, #tpu.memory_space<vmem>>, vector<128x128xbf16>
    %cst = arith.constant dense<0.000000e+00> : vector<512x128xf32>
    %2 = tpu.matmul %0, %1, %cst {dimension_numbers = #tpu.dot_dimension_numbers<[1], [0], [0], [1], [0, 0, 1, 1], [], []>} : vector<512x128xbf16>, vector<128x128xbf16>, vector<512x128xf32> -> vector<512x128xf32>
    %3 = arith.truncf %2 : vector<512x128xf32> to vector<512x128xbf16>
    %c0_3 = arith.constant 0 : index
    %c0_4 = arith.constant 0 : index
    %4 = vector.load %arg5[%c0_3, %c0_4] : memref<512x128xbf16, #tpu.memory_space<vmem>>, vector<512x128xbf16>
    tpu.vector_store %arg5[%c0_3, %c0_4], %3 {strides = array<i32>} : memref<512x128xbf16, #tpu.memory_space<vmem>>, vector<512x128xbf16>,
    %cst_5 = arith.constant dense<0.000000e+00> : vector<128xf32>
    %5 = vector.multi_reduction <add>, %2, %cst_5 [0] : vector<512x128xf32> to vector<128xf32>
    %6 = vector.shape_cast %5 : vector<128xf32> to vector<1x128xf32>
    %7 = vector.shape_cast %6 : vector<1x128xf32> to vector<1x1x128xf32>
    %c0_6 = arith.constant 0 : index
    %c0_7 = arith.constant 0 : index
    %c0_8 = arith.constant 0 : index
    %8 = vector.load %arg6[%c0_6, %c0_7, %c0_8] : memref<1x1x128xf32, #tpu.memory_space<vmem>>, vector<1x1x128xf32>
    tpu.vector_store %arg6[%c0_6, %c0_7, %c0_8], %7 {strides = array<i32>} : memref<1x1x128xf32, #tpu.memory_space<vmem>>, vector<1x1x128xf32>,
    %9 = arith.mulf %2, %2 : vector<512x128xf32>
    %cst_9 = arith.constant dense<0.000000e+00> : vector<128xf32>
    %10 = vector.multi_reduction <add>, %9, %cst_9 [0] : vector<512x128xf32> to vector<128xf32>
    %11 = vector.shape_cast %10 : vector<128xf32> to vector<1x128xf32>
    %12 = vector.shape_cast %11 : vector<1x128xf32> to vector<1x1x128xf32>
    %c0_10 = arith.constant 0 : index
    %c0_11 = arith.constant 0 : index
    %c0_12 = arith.constant 0 : index
    %13 = vector.load %arg7[%c0_10, %c0_11, %c0_12] : memref<1x1x128xf32, #tpu.memory_space<vmem>>, vector<1x1x128xf32>
    tpu.vector_store %arg7[%c0_10, %c0_11, %c0_12], %12 {strides = array<i32>} : memref<1x1x128xf32, #tpu.memory_space<vmem>>, vector<1x1x128xf32>,
    return
  }
  func.func @transform_0(%arg0: i32, %arg1: i32) -> (i32, i32) {
    %c0_i32 = arith.constant 0 : i32
    %c0_i32_0 = arith.constant 0 : i32
    return %arg0, %c0_i32 : i32, i32
  }
  func.func @transform_1(%arg0: i32, %arg1: i32) -> (i32, i32) {
    %c0_i32 = arith.constant 0 : i32
    %c0_i32_0 = arith.constant 0 : i32
    return %c0_i32, %arg1 : i32, i32
  }
  func.func @transform_2(%arg0: i32, %arg1: i32) -> (i32, i32) {
    %c0_i32 = arith.constant 0 : i32
    %c0_i32_0 = arith.constant 0 : i32
    return %c0_i32, %arg1 : i32, i32
  }
  func.func @transform_3(%arg0: i32, %arg1: i32) -> (i32, i32) {
    %c0_i32 = arith.constant 0 : i32
    return %arg0, %arg1 : i32, i32
  }
  func.func @transform_4(%arg0: i32, %arg1: i32) -> (i32, i32, i32) {
    %c0_i32 = arith.constant 0 : i32
    %c0_i32_0 = arith.constant 0 : i32
    return %arg0, %c0_i32, %arg1 : i32, i32, i32
  }
  func.func @transform_5(%arg0: i32, %arg1: i32) -> (i32, i32, i32) {
    %c0_i32 = arith.constant 0 : i32
    %c0_i32_0 = arith.constant 0 : i32
    return %arg0, %c0_i32, %arg1 : i32, i32, i32
  }
}

module attributes {stable_mosaic.version = 11 : i64} {
  func.func @_bn_act_kernel(%arg0: i32, %arg1: memref<512x128xbf16, #tpu.memory_space<vmem>>, %arg2: memref<1x128xf32, #tpu.memory_space<vmem>>, %arg3: memref<1x128xf32, #tpu.memory_space<vmem>>, %arg4: memref<512x128xf32, #tpu.memory_space<vmem>>) attributes {dimension_semantics = [#tpu.dimension_semantics<parallel>], iteration_bounds = array<i64: 2>, scalar_prefetch = 0 : i64, scratch_operands = 0 : i64, tpu.core_type = #tpu.core_type<tc>, window_params = [{transform_indices = @transform_0, window_bounds = array<i64: 512, 128>}, {pipeline_mode = #tpu.pipeline_mode<synchronous>, transform_indices = @transform_1, window_bounds = array<i64: 1, 128>}, {pipeline_mode = #tpu.pipeline_mode<synchronous>, transform_indices = @transform_2, window_bounds = array<i64: 1, 128>}, {transform_indices = @transform_3, window_bounds = array<i64: 512, 128>}]} {
    %c0 = arith.constant 0 : index
    %c0_0 = arith.constant 0 : index
    %0 = vector.load %arg1[%c0, %c0_0] : memref<512x128xbf16, #tpu.memory_space<vmem>>, vector<512x128xbf16>
    %1 = arith.extf %0 : vector<512x128xbf16> to vector<512x128xf32>
    %c0_1 = arith.constant 0 : index
    %c0_2 = arith.constant 0 : index
    %2 = vector.load %arg2[%c0_1, %c0_2] : memref<1x128xf32, #tpu.memory_space<vmem>>, vector<1x128xf32>
    %3 = vector.broadcast %2 : vector<1x128xf32> to vector<512x128xf32>
    %4 = arith.mulf %1, %3 : vector<512x128xf32>
    %c0_3 = arith.constant 0 : index
    %c0_4 = arith.constant 0 : index
    %5 = vector.load %arg3[%c0_3, %c0_4] : memref<1x128xf32, #tpu.memory_space<vmem>>, vector<1x128xf32>
    %6 = vector.broadcast %5 : vector<1x128xf32> to vector<512x128xf32>
    %7 = arith.addf %4, %6 : vector<512x128xf32>
    %cst = arith.constant 0.000000e+00 : f32
    %8 = vector.broadcast %cst : f32 to vector<512x128xf32>
    %9 = arith.maximumf %7, %8 : vector<512x128xf32>
    %c0_5 = arith.constant 0 : index
    %c0_6 = arith.constant 0 : index
    %10 = vector.load %arg4[%c0_5, %c0_6] : memref<512x128xf32, #tpu.memory_space<vmem>>, vector<512x128xf32>
    tpu.vector_store %arg4[%c0_5, %c0_6], %9 {strides = array<i32>} : memref<512x128xf32, #tpu.memory_space<vmem>>, vector<512x128xf32>,
    return
  }
  func.func @transform_0(%arg0: i32) -> (i32, i32) {
    %c0_i32 = arith.constant 0 : i32
    %c0_i32_0 = arith.constant 0 : i32
    return %arg0, %c0_i32 : i32, i32
  }
  func.func @transform_1(%arg0: i32) -> (i32, i32) {
    %c0_i32 = arith.constant 0 : i32
    %c0_i32_0 = arith.constant 0 : i32
    %c0_i32_1 = arith.constant 0 : i32
    return %c0_i32, %c0_i32_0 : i32, i32
  }
  func.func @transform_2(%arg0: i32) -> (i32, i32) {
    %c0_i32 = arith.constant 0 : i32
    %c0_i32_0 = arith.constant 0 : i32
    %c0_i32_1 = arith.constant 0 : i32
    return %c0_i32, %c0_i32_0 : i32, i32
  }
  func.func @transform_3(%arg0: i32) -> (i32, i32) {
    %c0_i32 = arith.constant 0 : i32
    %c0_i32_0 = arith.constant 0 : i32
    return %arg0, %c0_i32 : i32, i32
  }
}

</mosaic_0001>

<bundles_post_ra>
// kernel: _lambda_.2
= control target key start
LH: loop header
LB: loop body
LE: loop exit
PB: predicated region body
PF: predicated region fallthrough
CT: control target
= control target key end

     0   :  { %s2244_s18 = smov 0   ;;  %s2246_s19 = smov 0   ;;  %s2579_s0 = inlined_call_operand.vmem [shape: bf16[1024,128], index: 0, kind: input, shape index: {}]   ;;  %s2580_s1 = inlined_call_operand.vmem [shape: bf16[128,128], index: 1, kind: input, shape index: {}]   ;;  %s2581_s2 = inlined_call_operand.vmem [shape: f32[1,128], index: 2, kind: input, shape index: {}]   ;;  %s2582_s3 = inlined_call_operand.vmem [shape: bf16[1024,128], index: 3, kind: output, shape index: {0}]   ;;  %s2583_s4 = inlined_call_operand.vmem [shape: f32[2,1,128], index: 4, kind: output, shape index: {1}]   ;;  %s2584_s5 = inlined_call_operand.vmem [shape: f32[2,1,128], index: 5, kind: output, shape index: {2}]  }
   0x1   :  { %s2248_s20 = smov 0  }
   0x2 LB: > { %s28_s2 = sadd.s32 1, %s2208_s19  ;;  %p1624_p0 = scmp.ge.s32.totalorder %s2212_s20, 1  ;;  %s2212_s20 = sphi %s2248_s20, %s16_s20   ;;  %s2208_s19 = sphi %s2246_s19, %s2586_s19   ;;  %s2204_s18 = sphi %s2244_s18, %s2585_s18  }
   0x3   : > { %p30_p1 = scmp.ge.s32.totalorder %s28_s2, 2  ;;  %p228_p2 = scmp.lt.s32.totalorder %s2212_s20, 3 }
   0x5   : > { %s2588_s2 = smov (%p30_p1, %s28_s2), 0  ;;  %p229_p3 = pnand %p1624_p0, %p228_p2 }
   0x6   : > { %v2150_v0 = vld [vmem:[%s2580_s1] sm:$0xff] (!%p229_p3)   ;;  %s1625_s23 = sshll.u32 (!%p229_p3), %s2204_s18, 6  ;;  %v2151_v1 = vld [vmem:[%s2580_s1 + $0x8] sm:$0xff] (!%p229_p3)   ;;  %v2152_v2 = vld [vmem:[%s2580_s1 + $0x10] sm:$0xff] (!%p229_p3)   ;;  %p300_p5 = scmp.lt.s32.totalorder (!%p229_p3), %s2204_s18, 1 }
   0x7   : > { %232 = sbr.rel (%p229_p3) target bundleno = 395 (0x18b), region = 32  ;;  %p279_p4 = scmp.lt.s32.totalorder (!%p229_p3), %s1625_s23, 127  ;;  %2030 = vmatprep.subr.bf16.mxu0 (!%p229_p3), %v2150_v0  ;;  %2110 = vmatprep.subr.bf16.mxu1 (!%p229_p3), %v2150_v0  ;;  %v2153_v3 = vld [vmem:[%s2580_s1 + $0x18] sm:$0xff] (!%p229_p3)   ;;  %v2154_v5 = vld [vmem:[%s2580_s1 + $0x20] sm:$0xff] (!%p229_p3)   ;;  %v2155_v6 = vld [vmem:[%s2580_s1 + $0x28] sm:$0xff] (!%p229_p3)  }
   0x8   : > { %2031 = vmatpush3.bf16.msra.mxu0 (!%p229_p3), %v2150_v0  ;;  %2118 = vmatpush3.bf16.msra.mxu1 (!%p229_p3), %v2150_v0  ;;  %v2156_v7 = vld [vmem:[%s2580_s1 + $0x30] sm:$0xff] (!%p229_p3)   ;;  %v2157_v8 = vld [vmem:[%s2580_s1 + $0x38] sm:$0xff] (!%p229_p3)  }
   0x9   : > { %2032 = vmatprep.subr.bf16.mxu0 (!%p229_p3), %v2151_v1  ;;  %2111 = vmatprep.subr.bf16.mxu1 (!%p229_p3), %v2151_v1 }
   0xc   : > { %2033 = vmatpush3.bf16.msra.mxu0 (!%p229_p3), %v2151_v1  ;;  %2119 = vmatpush3.bf16.msra.mxu1 (!%p229_p3), %v2151_v1 }
   0xd   : > { %2034 = vmatprep.subr.bf16.mxu0 (!%p229_p3), %v2152_v2  ;;  %2112 = vmatprep.subr.bf16.mxu1 (!%p229_p3), %v2152_v2 }
   0xe   : > { %s2590_s23 = smov (!%p279_p4, %s1625_s23), 127  ;;  %s2592_s18 = smov (!%p300_p5, %s2204_s18), 1 }
   0xf   : > { %s1626_s28 = sshll.u32 %s2590_s23, 2  ;;  %s305_s25 = scalar_lea.vmem %s2583_s4, %s2592_s18 }
  0x10   : > { %s2282_s6 = scalar_lea.vmem %s2579_s0, %s1626_s28  ;;  %2035 = vmatpush3.bf16.msra.mxu0 %v2152_v2  ;;  %2120 = vmatpush3.bf16.msra.mxu1 %v2152_v2  ;;  %s2340_s22 = scalar_lea.vmem %s2582_s3, %s1626_s28 }
  0x11   : > { %v2158_v4 = vld [vmem:[%s2282_s6] sm:$0xff]   ;;  %2036 = vmatprep.subr.bf16.mxu0 %v2153_v3  ;;  %2113 = vmatprep.subr.bf16.mxu1 %v2153_v3  ;;  %v2159_v10 = vld [vmem:[%s2282_s6 + $0x8] sm:$0xff]   ;;  %v2160_v11 = vld [vmem:[%s2282_s6 + $0x10] sm:$0xff]   ;;  %s311_s28 = scalar_lea.vmem %s2584_s5, %s2592_s18 }
  0x12   : > { %2046 = vmatprep.mubr.bf16.mxu0 %v2158_v4  ;;  %v2174_v9 = vld [vmem:[%s2282_s6 + $0x80] sm:$0xff]   ;;  %v2175_v12 = vld [vmem:[%s2282_s6 + $0x88] sm:$0xff]   ;;  %v2176_v13 = vld [vmem:[%s2282_s6 + $0x90] sm:$0xff]  }
  0x13   : > { %2078 = vmatprep.mubr.bf16.mxu1 %v2174_v9  ;;  %v2161_v14 = vld [vmem:[%s2282_s6 + $0x18] sm:$0xff]   ;;  %v2162_v15 = vld [vmem:[%s2282_s6 + $0x20] sm:$0xff]   ;;  %v2163_v18 = vld [vmem:[%s2282_s6 + $0x28] sm:$0xff]  }
  0x14   : > { %2037 = vmatpush3.bf16.msra.mxu0 %v2153_v3  ;;  %2121 = vmatpush3.bf16.msra.mxu1 %v2153_v3  ;;  %v2177_v16 = vld [vmem:[%s2282_s6 + $0x98] sm:$0xff]   ;;  %v2178_v17 = vld [vmem:[%s2282_s6 + $0xa0] sm:$0xff]   ;;  %v2179_v19 = vld [vmem:[%s2282_s6 + $0xa8] sm:$0xff]  }
  0x15   : > { %2038 = vmatprep.subr.bf16.mxu0 %v2154_v5  ;;  %2114 = vmatprep.subr.bf16.mxu1 %v2154_v5  ;;  %v2164_v20 = vld [vmem:[%s2282_s6 + $0x30] sm:$0xff]   ;;  %v2165_v22 = vld [vmem:[%s2282_s6 + $0x38] sm:$0xff]   ;;  %v2166_v24 = vld [vmem:[%s2282_s6 + $0x40] sm:$0xff]  }
  0x16   : > { %v2180_v21 = vld [vmem:[%s2282_s6 + $0xb0] sm:$0xff]   ;;  %v2181_v23 = vld [vmem:[%s2282_s6 + $0xb8] sm:$0xff]   ;;  %v2182_v25 = vld [vmem:[%s2282_s6 + $0xc0] sm:$0xff]  }
  0x17   : > { %v2167_v26 = vld [vmem:[%s2282_s6 + $0x48] sm:$0xff]   ;;  %v2168_v28 = vld [vmem:[%s2282_s6 + $0x50] sm:$0xff]   ;;  %v2169_v30 = vld [vmem:[%s2282_s6 + $0x58] sm:$0xff]  }
  0x18   : > { %2039 = vmatpush3.bf16.msra.mxu0 %v2154_v5  ;;  %2122 = vmatpush3.bf16.msra.mxu1 %v2154_v5  ;;  %v2183_v27 = vld [vmem:[%s2282_s6 + $0xc8] sm:$0xff]   ;;  %v2184_v29 = vld [vmem:[%s2282_s6 + $0xd0] sm:$0xff]   ;;  %v2185_v31 = vld [vmem:[%s2282_s6 + $0xd8] sm:$0xff]  }
  0x19   : > { %2040 = vmatprep.subr.bf16.mxu0 %v2155_v6  ;;  %2115 = vmatprep.subr.bf16.mxu1 %v2155_v6  ;;  %v2170_v32 = vld [vmem:[%s2282_s6 + $0x60] sm:$0xff]   ;;  %v2171_v34 = vld [vmem:[%s2282_s6 + $0x68] sm:$0xff]   ;;  %v2172_v36 = vld [vmem:[%s2282_s6 + $0x70] sm:$0xff]  }
  0x1a   : > { %v2186_v33 = vld [vmem:[%s2282_s6 + $0xe0] sm:$0xff]   ;;  %v2187_v35 = vld [vmem:[%s2282_s6 + $0xe8] sm:$0xff]   ;;  %v2188_v37 = vld [vmem:[%s2282_s6 + $0xf0] sm:$0xff]  }
  0x1b   : > { %v2173_v38 = vld [vmem:[%s2282_s6 + $0x78] sm:$0xff]  }
  0x1c   : > { %2041 = vmatpush3.bf16.msra.mxu0 %v2155_v6  ;;  %2123 = vmatpush3.bf16.msra.mxu1 %v2155_v6  ;;  %v2189_v39 = vld [vmem:[%s2282_s6 + $0xf8] sm:$0xff]  }
  0x1d   : > { %2042 = vmatprep.subr.bf16.mxu0 %v2156_v7  ;;  %2116 = vmatprep.subr.bf16.mxu1 %v2156_v7 }
  0x20   : > { %2043 = vmatpush3.bf16.msra.mxu0 %v2156_v7  ;;  %2124 = vmatpush3.bf16.msra.mxu1 %v2156_v7 }
  0x21   : > { %2044 = vmatprep.subr.bf16.mxu0 %v2157_v8  ;;  %2117 = vmatprep.subr.bf16.mxu1 %v2157_v8 }
  0x24   : > { %2045 = vmatpush3.bf16.msra.mxu0 %v2157_v8  ;;  %2125 = vmatpush3.bf16.msra.mxu1 %v2157_v8 }
  0x27   : > { %2047 = vmatmul.mubr.bf16.vlgmr.msra.gmra.mrb[0].mxu0 %v2159_v10  ;;  %2079 = vmatmul.mubr.bf16.vlgmr.msra.gmra.mrb[0].mxu1 %v2175_v12 }
  0x28   : > { %2050 = vmatprep.mubr.bf16.mxu0 %v2160_v11  ;;  %2082 = vmatprep.mubr.bf16.mxu1 %v2176_v13 }
  0x2f   : > { %2051 = vmatmul.mubr.bf16.gmra.mrb[4].mxu0 %v2161_v14  ;;  %2083 = vmatmul.mubr.bf16.gmra.mrb[4].mxu1 %v2177_v16 }
  0x30   : > { %2054 = vmatprep.mubr.bf16.mxu0 %v2162_v15  ;;  %2086 = vmatprep.mubr.bf16.mxu1 %v2178_v17 }
  0x37   : > { %2055 = vmatmul.mubr.bf16.gmra.mrb[8].mxu0 %v2163_v18  ;;  %2087 = vmatmul.mubr.bf16.gmra.mrb[8].mxu1 %v2179_v19 }
  0x38   : > { %2058 = vmatprep.mubr.bf16.mxu0 %v2164_v20  ;;  %2090 = vmatprep.mubr.bf16.mxu1 %v2180_v21 }
  0x3f   : > { %2059 = vmatmul.mubr.bf16.gmra.mrb[12].mxu0 %v2165_v22  ;;  %2091 = vmatmul.mubr.bf16.gmra.mrb[12].mxu1 %v2181_v23 }
  0x40   : > { %2062 = vmatprep.mubr.bf16.mxu0 %v2166_v24  ;;  %2094 = vmatprep.mubr.bf16.mxu1 %v2182_v25 }
  0x47   : > { %2063 = vmatmul.mubr.bf16.gmra.mrb[16].mxu0 %v2167_v26  ;;  %2095 = vmatmul.mubr.bf16.gmra.mrb[16].mxu1 %v2183_v27 }
  0x48   : > { %2066 = vmatprep.mubr.bf16.mxu0 %v2168_v28  ;;  %2098 = vmatprep.mubr.bf16.mxu1 %v2184_v29 }
  0x4f   : > { %2067 = vmatmul.mubr.bf16.gmra.mrb[20].mxu0 %v2169_v30  ;;  %2099 = vmatmul.mubr.bf16.gmra.mrb[20].mxu1 %v2185_v31 }
  0x50   : > { %2070 = vmatprep.mubr.bf16.mxu0 %v2170_v32  ;;  %2102 = vmatprep.mubr.bf16.mxu1 %v2186_v33 }
  0x57   : > { %2071 = vmatmul.mubr.bf16.gmra.mrb[24].mxu0 %v2171_v34  ;;  %2103 = vmatmul.mubr.bf16.gmra.mrb[24].mxu1 %v2187_v35 }
  0x58   : > { %2074 = vmatprep.mubr.bf16.mxu0 %v2172_v36  ;;  %2106 = vmatprep.mubr.bf16.mxu1 %v2188_v37 }
  0x5f   : > { %2075 = vmatmul.mubr.bf16.gmra.mrb[28].mxu0 %v2173_v38  ;;  %2107 = vmatmul.mubr.bf16.gmra.mrb[28].mxu1 %v2189_v39 }
  0xfa   : > { %v2048_v40 = vpop.f32.mrb[0].mxu0  ;;  %v2331_v41 = vpop.f32.mrb[0].mxu1 }
  0xfb   : > { %v667_v42 = vpop.f32.mrb[1].mxu0  ;;  %v2333_v43 = vpop.f32.mrb[1].mxu1  ;;  %v1314_v55 = vmul.f32 %v2048_v40, %v2048_v40 }
  0xfc   : > { %v2049_v44 = vpop.f32.mrb[2].mxu0  ;;  %v2342_v45 = vpop.f32.mrb[2].mxu1  ;;  %v1312_v46 = vmul.f32 %v667_v42, %v667_v42 }
  0xfd   : > { %v1807_v47 = vpack.c.bf16 %v2049_v44, %v2048_v40  ;;  %v670_v48 = vpop.f32.mrb[3].mxu0  ;;  %v1887_v49 = vpack.c.bf16 %v2342_v45, %v2331_v41  ;;  %v2346_v50 = vpop.f32.mrb[3].mxu1  ;;  %v1315_v58 = vmul.f32 %v2049_v44, %v2049_v44 }
  0xfe   : > { %v1802_v51 = vpack.c.bf16 %v670_v48, %v667_v42  ;;  %v1242_v52 = vadd.f32 %v670_v48, %v667_v42  ;;  %v1313_v53 = vmul.f32 %v670_v48, %v670_v48  ;;  %v1882_v54 = vpack.c.bf16 %v2346_v50, %v2333_v43 }
  0xff   : > { %1959 = vst [vmem:[%s2340_s22 + $0x8] sm:$0xff] %v1807_v47   ;;  %1975 = vst [vmem:[%s2340_s22 + $0x88] sm:$0xff] %v1887_v49  }
 0x100   : > { %1803 = vst [vmem:[%s2340_s22] sm:$0xff] %v1802_v51   ;;  %v1243_v56 = vadd.f32 %v2048_v40, %v1242_v52  ;;  %v1376_v57 = vadd.f32 %v1313_v53, %v1312_v46  ;;  %1974 = vst [vmem:[%s2340_s22 + $0x80] sm:$0xff] %v1882_v54  }
 0x102   : > { %v1377_v59 = vadd.f32 %v1376_v57, %v1314_v55  ;;  %v2052_v60 = vpop.f32.mrb[4].mxu0  ;;  %v1244_v61 = vadd.f32 %v2049_v44, %v1243_v56  ;;  %v2354_v62 = vpop.f32.mrb[4].mxu1 }
 0x103   : > { %v683_v63 = vpop.f32.mrb[5].mxu0  ;;  %v2356_v0 = vpop.f32.mrb[5].mxu1  ;;  %v1318_v15 = vmul.f32 %v2052_v60, %v2052_v60 }
 0x104   : > { %v1245_v1 = vadd.f32 %v1244_v61, %v683_v63  ;;  %v1316_v2 = vmul.f32 %v683_v63, %v683_v63  ;;  %v1378_v3 = vadd.f32 %v1377_v59, %v1315_v58  ;;  %v2053_v4 = vpop.f32.mrb[6].mxu0  ;;  %v2358_v5 = vpop.f32.mrb[6].mxu1 }
 0x105   : > { %v1817_v6 = vpack.c.bf16 %v2053_v4, %v2052_v60  ;;  %v686_v7 = vpop.f32.mrb[7].mxu0  ;;  %v1897_v8 = vpack.c.bf16 %v2358_v5, %v2354_v62  ;;  %v2362_v9 = vpop.f32.mrb[7].mxu1  ;;  %v1319_v18 = vmul.f32 %v2053_v4, %v2053_v4 }
 0x106   : > { %v1379_v10 = vadd.f32 %v1378_v3, %v1316_v2  ;;  %v1812_v11 = vpack.c.bf16 %v686_v7, %v683_v63  ;;  %v1246_v12 = vadd.f32 %v1245_v1, %v686_v7  ;;  %v1317_v13 = vmul.f32 %v686_v7, %v686_v7 }
 0x107   : > { %1961 = vst [vmem:[%s2340_s22 + $0x18] sm:$0xff] %v1817_v6   ;;  %1977 = vst [vmem:[%s2340_s22 + $0x98] sm:$0xff] %v1897_v8   ;;  %v1892_v14 = vpack.c.bf16 %v2362_v9, %v2356_v0 }
 0x108   : > { %1960 = vst [vmem:[%s2340_s22 + $0x10] sm:$0xff] %v1812_v11   ;;  %v1247_v16 = vadd.f32 %v2052_v60, %v1246_v12  ;;  %v1380_v17 = vadd.f32 %v1379_v10, %v1317_v13 }
 0x109   : > { %1976 = vst [vmem:[%s2340_s22 + $0x90] sm:$0xff] %v1892_v14  }
 0x10a   : > { %v1381_v19 = vadd.f32 %v1380_v17, %v1318_v15  ;;  %v2056_v20 = vpop.f32.mrb[8].mxu0  ;;  %v1248_v21 = vadd.f32 %v2053_v4, %v1247_v16  ;;  %v2370_v22 = vpop.f32.mrb[8].mxu1 }
 0x10b   : > { %v699_v23 = vpop.f32.mrb[9].mxu0  ;;  %v2372_v24 = vpop.f32.mrb[9].mxu1  ;;  %v1322_v39 = vmul.f32 %v2056_v20, %v2056_v20 }
 0x10c   : > { %v1249_v25 = vadd.f32 %v1248_v21, %v699_v23  ;;  %v1320_v26 = vmul.f32 %v699_v23, %v699_v23  ;;  %v1382_v27 = vadd.f32 %v1381_v19, %v1319_v18  ;;  %v2057_v28 = vpop.f32.mrb[10].mxu0  ;;  %v2374_v29 = vpop.f32.mrb[10].mxu1 }
 0x10d   : > { %v1827_v30 = vpack.c.bf16 %v2057_v28, %v2056_v20  ;;  %v702_v31 = vpop.f32.mrb[11].mxu0  ;;  %v1907_v32 = vpack.c.bf16 %v2374_v29, %v2370_v22  ;;  %v2378_v33 = vpop.f32.mrb[11].mxu1  ;;  %v1323_v44 = vmul.f32 %v2057_v28, %v2057_v28 }
 0x10e   : > { %v1383_v34 = vadd.f32 %v1382_v27, %v1320_v26  ;;  %v1822_v35 = vpack.c.bf16 %v702_v31, %v699_v23  ;;  %v1250_v36 = vadd.f32 %v1249_v25, %v702_v31  ;;  %v1321_v37 = vmul.f32 %v702_v31, %v702_v31 }
 0x10f   : > { %1963 = vst [vmem:[%s2340_s22 + $0x28] sm:$0xff] %v1827_v30   ;;  %1979 = vst [vmem:[%s2340_s22 + $0xa8] sm:$0xff] %v1907_v32   ;;  %v1902_v38 = vpack.c.bf16 %v2378_v33, %v2372_v24 }
 0x110   : > { %1962 = vst [vmem:[%s2340_s22 + $0x20] sm:$0xff] %v1822_v35   ;;  %v1251_v40 = vadd.f32 %v2056_v20, %v1250_v36  ;;  %v1384_v42 = vadd.f32 %v1383_v34, %v1321_v37 }
 0x111   : > { %1978 = vst [vmem:[%s2340_s22 + $0xa0] sm:$0xff] %v1902_v38  }
 0x112   : > { %v1385_v46 = vadd.f32 %v1384_v42, %v1322_v39  ;;  %v2060_v47 = vpop.f32.mrb[12].mxu0  ;;  %v1252_v48 = vadd.f32 %v2057_v28, %v1251_v40  ;;  %v2386_v49 = vpop.f32.mrb[12].mxu1 }
 0x113   : > { %v715_v51 = vpop.f32.mrb[13].mxu0  ;;  %v2388_v52 = vpop.f32.mrb[13].mxu1  ;;  %v1326_v6 = vmul.f32 %v2060_v47, %v2060_v47 }
 0x114   : > { %v1253_v53 = vadd.f32 %v1252_v48, %v715_v51  ;;  %v1324_v54 = vmul.f32 %v715_v51, %v715_v51  ;;  %v1386_v55 = vadd.f32 %v1385_v46, %v1323_v44  ;;  %v2061_v56 = vpop.f32.mrb[14].mxu0  ;;  %v2390_v57 = vpop.f32.mrb[14].mxu1 }
 0x115   : > { %v1837_v58 = vpack.c.bf16 %v2061_v56, %v2060_v47  ;;  %v718_v59 = vpop.f32.mrb[15].mxu0  ;;  %v1917_v60 = vpack.c.bf16 %v2390_v57, %v2386_v49  ;;  %v2394_v61 = vpop.f32.mrb[15].mxu1  ;;  %v1327_v10 = vmul.f32 %v2061_v56, %v2061_v56 }
 0x116   : > { %v1387_v63 = vadd.f32 %v1386_v55, %v1324_v54  ;;  %v1832_v1 = vpack.c.bf16 %v718_v59, %v715_v51  ;;  %v1254_v2 = vadd.f32 %v1253_v53, %v718_v59  ;;  %v1325_v3 = vmul.f32 %v718_v59, %v718_v59 }
 0x117   : > { %1965 = vst [vmem:[%s2340_s22 + $0x38] sm:$0xff] %v1837_v58   ;;  %1981 = vst [vmem:[%s2340_s22 + $0xb8] sm:$0xff] %v1917_v60   ;;  %v1912_v4 = vpack.c.bf16 %v2394_v61, %v2388_v52 }
 0x118   : > { %1964 = vst [vmem:[%s2340_s22 + $0x30] sm:$0xff] %v1832_v1   ;;  %v1255_v7 = vadd.f32 %v2060_v47, %v1254_v2  ;;  %v1388_v8 = vadd.f32 %v1387_v63, %v1325_v3 }
 0x119   : > { %1980 = vst [vmem:[%s2340_s22 + $0xb0] sm:$0xff] %v1912_v4  }
 0x11a   : > { %v1389_v11 = vadd.f32 %v1388_v8, %v1326_v6  ;;  %v2064_v12 = vpop.f32.mrb[16].mxu0  ;;  %v1256_v13 = vadd.f32 %v2061_v56, %v1255_v7  ;;  %v2402_v14 = vpop.f32.mrb[16].mxu1 }
 0x11b   : > { %v731_v15 = vpop.f32.mrb[17].mxu0  ;;  %v2404_v16 = vpop.f32.mrb[17].mxu1  ;;  %v1330_v35 = vmul.f32 %v2064_v12, %v2064_v12 }
 0x11c   : > { %v1257_v17 = vadd.f32 %v1256_v13, %v731_v15  ;;  %v1328_v18 = vmul.f32 %v731_v15, %v731_v15  ;;  %v1390_v19 = vadd.f32 %v1389_v11, %v1327_v10  ;;  %v2065_v20 = vpop.f32.mrb[18].mxu0  ;;  %v2406_v21 = vpop.f32.mrb[18].mxu1 }
 0x11d   : > { %v1847_v23 = vpack.c.bf16 %v2065_v20, %v2064_v12  ;;  %v734_v25 = vpop.f32.mrb[19].mxu0  ;;  %v1927_v26 = vpack.c.bf16 %v2406_v21, %v2402_v14  ;;  %v2410_v27 = vpop.f32.mrb[19].mxu1  ;;  %v1331_v38 = vmul.f32 %v2065_v20, %v2065_v20 }
 0x11e   : > { %v1391_v28 = vadd.f32 %v1390_v19, %v1328_v18  ;;  %v1842_v30 = vpack.c.bf16 %v734_v25, %v731_v15  ;;  %v1258_v31 = vadd.f32 %v1257_v17, %v734_v25  ;;  %v1329_v32 = vmul.f32 %v734_v25, %v734_v25 }
 0x11f   : > { %1967 = vst [vmem:[%s2340_s22 + $0x48] sm:$0xff] %v1847_v23   ;;  %1983 = vst [vmem:[%s2340_s22 + $0xc8] sm:$0xff] %v1927_v26   ;;  %v1922_v34 = vpack.c.bf16 %v2410_v27, %v2404_v16 }
 0x120   : > { %1966 = vst [vmem:[%s2340_s22 + $0x40] sm:$0xff] %v1842_v30   ;;  %v1259_v36 = vadd.f32 %v2064_v12, %v1258_v31  ;;  %v1392_v37 = vadd.f32 %v1391_v28, %v1329_v32 }
 0x121   : > { %1982 = vst [vmem:[%s2340_s22 + $0xc0] sm:$0xff] %v1922_v34  }
 0x122   : > { %v1393_v39 = vadd.f32 %v1392_v37, %v1330_v35  ;;  %v2068_v40 = vpop.f32.mrb[20].mxu0  ;;  %v1260_v42 = vadd.f32 %v2065_v20, %v1259_v36  ;;  %v2418_v44 = vpop.f32.mrb[20].mxu1 }
 0x123   : > { %v747_v46 = vpop.f32.mrb[21].mxu0  ;;  %v2420_v47 = vpop.f32.mrb[21].mxu1  ;;  %v1334_v6 = vmul.f32 %v2068_v40, %v2068_v40 }
 0x124   : > { %v1261_v48 = vadd.f32 %v1260_v42, %v747_v46  ;;  %v1332_v51 = vmul.f32 %v747_v46, %v747_v46  ;;  %v1394_v53 = vadd.f32 %v1393_v39, %v1331_v38  ;;  %v2069_v54 = vpop.f32.mrb[22].mxu0  ;;  %v2422_v55 = vpop.f32.mrb[22].mxu1 }
 0x125   : > { %v1857_v56 = vpack.c.bf16 %v2069_v54, %v2068_v40  ;;  %v750_v58 = vpop.f32.mrb[23].mxu0  ;;  %v1937_v59 = vpack.c.bf16 %v2422_v55, %v2418_v44  ;;  %v2426_v60 = vpop.f32.mrb[23].mxu1  ;;  %v1335_v10 = vmul.f32 %v2069_v54, %v2069_v54 }
 0x126   : > { %v1395_v63 = vadd.f32 %v1394_v53, %v1332_v51  ;;  %v1852_v1 = vpack.c.bf16 %v750_v58, %v747_v46  ;;  %v1262_v2 = vadd.f32 %v1261_v48, %v750_v58  ;;  %v1333_v3 = vmul.f32 %v750_v58, %v750_v58 }
 0x127   : > { %1969 = vst [vmem:[%s2340_s22 + $0x58] sm:$0xff] %v1857_v56   ;;  %1985 = vst [vmem:[%s2340_s22 + $0xd8] sm:$0xff] %v1937_v59   ;;  %v1932_v4 = vpack.c.bf16 %v2426_v60, %v2420_v47 }
 0x128   : > { %1968 = vst [vmem:[%s2340_s22 + $0x50] sm:$0xff] %v1852_v1   ;;  %v1263_v7 = vadd.f32 %v2068_v40, %v1262_v2  ;;  %v1396_v8 = vadd.f32 %v1395_v63, %v1333_v3 }
 0x129   : > { %1984 = vst [vmem:[%s2340_s22 + $0xd0] sm:$0xff] %v1932_v4  }
 0x12a   : > { %v1397_v11 = vadd.f32 %v1396_v8, %v1334_v6  ;;  %v2072_v12 = vpop.f32.mrb[24].mxu0  ;;  %v1264_v13 = vadd.f32 %v2069_v54, %v1263_v7  ;;  %v2434_v15 = vpop.f32.mrb[24].mxu1 }
 0x12b   : > { %v763_v17 = vpop.f32.mrb[25].mxu0  ;;  %v2436_v18 = vpop.f32.mrb[25].mxu1  ;;  %v1338_v39 = vmul.f32 %v2072_v12, %v2072_v12 }
 0x12c   : > { %v1265_v19 = vadd.f32 %v1264_v13, %v763_v17  ;;  %v1336_v20 = vmul.f32 %v763_v17, %v763_v17  ;;  %v1398_v23 = vadd.f32 %v1397_v11, %v1335_v10  ;;  %v2073_v25 = vpop.f32.mrb[26].mxu0  ;;  %v2438_v26 = vpop.f32.mrb[26].mxu1 }
 0x12d   : > { %v1867_v28 = vpack.c.bf16 %v2073_v25, %v2072_v12  ;;  %v766_v30 = vpop.f32.mrb[27].mxu0  ;;  %v1947_v31 = vpack.c.bf16 %v2438_v26, %v2434_v15  ;;  %v2442_v32 = vpop.f32.mrb[27].mxu1  ;;  %v1339_v46 = vmul.f32 %v2073_v25, %v2073_v25 }
 0x12e   : > { %v1399_v34 = vadd.f32 %v1398_v23, %v1336_v20  ;;  %v1862_v35 = vpack.c.bf16 %v766_v30, %v763_v17  ;;  %v1266_v36 = vadd.f32 %v1265_v19, %v766_v30  ;;  %v1337_v37 = vmul.f32 %v766_v30, %v766_v30 }
 0x12f   : > { %1971 = vst [vmem:[%s2340_s22 + $0x68] sm:$0xff] %v1867_v28   ;;  %1987 = vst [vmem:[%s2340_s22 + $0xe8] sm:$0xff] %v1947_v31   ;;  %v1942_v38 = vpack.c.bf16 %v2442_v32, %v2436_v18  ;;  %v1344_v31 = vmul.f32 %v2333_v43, %v2333_v43 }
 0x130   : > { %1970 = vst [vmem:[%s2340_s22 + $0x60] sm:$0xff] %v1862_v35   ;;  %v1267_v40 = vadd.f32 %v2072_v12, %v1266_v36  ;;  %v1400_v42 = vadd.f32 %v1399_v34, %v1337_v37 }
 0x131   : > { %1986 = vst [vmem:[%s2340_s22 + $0xe0] sm:$0xff] %v1942_v38   ;;  %v1345_v38 = vmul.f32 %v2346_v50, %v2346_v50 }
 0x132   : > { %v1401_v48 = vadd.f32 %v1400_v42, %v1338_v39  ;;  %v2076_v51 = vpop.f32.mrb[28].mxu0  ;;  %v1268_v53 = vadd.f32 %v2073_v25, %v1267_v40  ;;  %v2450_v54 = vpop.f32.mrb[28].mxu1  ;;  %v1346_v39 = vmul.f32 %v2331_v41, %v2331_v41 }
 0x133   : > { %v779_v56 = vpop.f32.mrb[29].mxu0  ;;  %v2452_v58 = vpop.f32.mrb[29].mxu1  ;;  %v1342_v19 = vmul.f32 %v2076_v51, %v2076_v51 }
 0x134   : > { %v1269_v59 = vadd.f32 %v1268_v53, %v779_v56  ;;  %v1340_v63 = vmul.f32 %v779_v56, %v779_v56  ;;  %v1402_v1 = vadd.f32 %v1401_v48, %v1339_v46  ;;  %v2077_v2 = vpop.f32.mrb[30].mxu0  ;;  %v2454_v3 = vpop.f32.mrb[30].mxu1  ;;  %v1347_v46 = vmul.f32 %v2342_v45, %v2342_v45 }
 0x135   : > { %v1877_v4 = vpack.c.bf16 %v2077_v2, %v2076_v51  ;;  %v782_v6 = vpop.f32.mrb[31].mxu0  ;;  %v1957_v7 = vpack.c.bf16 %v2454_v3, %v2450_v54  ;;  %v2458_v8 = vpop.f32.mrb[31].mxu1  ;;  %v1343_v25 = vmul.f32 %v2077_v2, %v2077_v2 }
 0x136   : > { %v1403_v10 = vadd.f32 %v1402_v1, %v1340_v63  ;;  %v1872_v11 = vpack.c.bf16 %v782_v6, %v779_v56  ;;  %v1270_v12 = vadd.f32 %v1269_v59, %v782_v6  ;;  %v1341_v13 = vmul.f32 %v782_v6, %v782_v6 }
 0x137   : > { %1973 = vst [vmem:[%s2340_s22 + $0x78] sm:$0xff] %v1877_v4   ;;  %1989 = vst [vmem:[%s2340_s22 + $0xf8] sm:$0xff] %v1957_v7   ;;  %v1952_v17 = vpack.c.bf16 %v2458_v8, %v2452_v58  ;;  %v1349_v63 = vmul.f32 %v2362_v9, %v2362_v9 }
 0x138   : > { %1972 = vst [vmem:[%s2340_s22 + $0x70] sm:$0xff] %v1872_v11   ;;  %v1271_v20 = vadd.f32 %v2076_v51, %v1270_v12  ;;  %v1404_v23 = vadd.f32 %v1403_v10, %v1341_v13  ;;  %v1353_v12 = vmul.f32 %v2378_v33, %v2378_v33 }
 0x139   : > { %1988 = vst [vmem:[%s2340_s22 + $0xf0] sm:$0xff] %v1952_v17  }
 0x13a   : > { %v1405_v28 = vadd.f32 %v1404_v23, %v1342_v19  ;;  %v1272_v30 = vadd.f32 %v2077_v2, %v1271_v20 }
 0x13c   : > { %v1273_v34 = vadd.f32 %v1272_v30, %v2333_v43  ;;  %v1406_v35 = vadd.f32 %v1405_v28, %v1343_v25  ;;  %v1348_v43 = vmul.f32 %v2356_v0, %v2356_v0  ;;  %v1357_v30 = vmul.f32 %v2394_v61, %v2394_v61 }
 0x13e   : > { %v1407_v36 = vadd.f32 %v1406_v35, %v1344_v31  ;;  %v1274_v37 = vadd.f32 %v1273_v34, %v2346_v50 }
 0x140   : > { %v1275_v40 = vadd.f32 %v2331_v41, %v1274_v37  ;;  %v1408_v42 = vadd.f32 %v1407_v36, %v1345_v38  ;;  %v1350_v41 = vmul.f32 %v2354_v62, %v2354_v62 }
 0x142   : > { %v1409_v48 = vadd.f32 %v1408_v42, %v1346_v39  ;;  %v1276_v51 = vadd.f32 %v2342_v45, %v1275_v40  ;;  %v1351_v45 = vmul.f32 %v2358_v5, %v2358_v5  ;;  %v1361_v40 = vmul.f32 %v2410_v27, %v2410_v27 }
 0x144   : > { %v1277_v53 = vadd.f32 %v1276_v51, %v2356_v0  ;;  %v1410_v56 = vadd.f32 %v1409_v48, %v1347_v46  ;;  %v1352_v0 = vmul.f32 %v2372_v24, %v2372_v24 }
 0x146   : > { %v1411_v59 = vadd.f32 %v1410_v56, %v1348_v43  ;;  %v1278_v50 = vadd.f32 %v1277_v53, %v2362_v9 }
 0x148   : > { %v1279_v1 = vadd.f32 %v2354_v62, %v1278_v50  ;;  %v1412_v2 = vadd.f32 %v1411_v59, %v1349_v63  ;;  %v1354_v62 = vmul.f32 %v2370_v22, %v2370_v22  ;;  %v1365_v59 = vmul.f32 %v2426_v60, %v2426_v60 }
 0x14a   : > { %v1413_v4 = vadd.f32 %v1412_v2, %v1350_v41  ;;  %v1280_v6 = vadd.f32 %v2358_v5, %v1279_v1  ;;  %v1355_v5 = vmul.f32 %v2374_v29, %v2374_v29 }
 0x14c   : > { %v1281_v7 = vadd.f32 %v1280_v6, %v2372_v24  ;;  %v1414_v10 = vadd.f32 %v1413_v4, %v1351_v45  ;;  %v1356_v24 = vmul.f32 %v2388_v52, %v2388_v52  ;;  %v1369_v6 = vmul.f32 %v2442_v32, %v2442_v32 }
 0x14e   : > { %v1415_v11 = vadd.f32 %v1414_v10, %v1352_v0  ;;  %v1282_v9 = vadd.f32 %v1281_v7, %v2378_v33 }
 0x150   : > { %v1283_v13 = vadd.f32 %v2370_v22, %v1282_v9  ;;  %v1416_v17 = vadd.f32 %v1415_v11, %v1353_v12  ;;  %v1358_v22 = vmul.f32 %v2386_v49, %v2386_v49  ;;  %v1372_v11 = vmul.f32 %v2452_v58, %v2452_v58 }
 0x152   : > { %v1417_v19 = vadd.f32 %v1416_v17, %v1354_v62  ;;  %v1284_v20 = vadd.f32 %v2374_v29, %v1283_v13  ;;  %v1359_v29 = vmul.f32 %v2390_v57, %v2390_v57  ;;  %v1374_v13 = vmul.f32 %v2450_v54, %v2450_v54 }
 0x154   : > { %v1285_v23 = vadd.f32 %v1284_v20, %v2388_v52  ;;  %v1418_v25 = vadd.f32 %v1417_v19, %v1355_v5  ;;  %v1360_v52 = vmul.f32 %v2404_v16, %v2404_v16 }
 0x156   : > { %v1419_v28 = vadd.f32 %v1418_v25, %v1356_v24  ;;  %v1286_v33 = vadd.f32 %v1285_v23, %v2394_v61 }
 0x158   : > { %v1287_v31 = vadd.f32 %v2386_v49, %v1286_v33  ;;  %v1420_v34 = vadd.f32 %v1419_v28, %v1357_v30  ;;  %v1362_v49 = vmul.f32 %v2402_v14, %v2402_v14 }
 0x15a   : > { %v1421_v35 = vadd.f32 %v1420_v34, %v1358_v22  ;;  %v1288_v36 = vadd.f32 %v2390_v57, %v1287_v31  ;;  %v1363_v57 = vmul.f32 %v2406_v21, %v2406_v21 }
 0x15c   : > { %v1289_v37 = vadd.f32 %v1288_v36, %v2404_v16  ;;  %v1422_v38 = vadd.f32 %v1421_v35, %v1359_v29  ;;  %v1364_v16 = vmul.f32 %v2420_v47, %v2420_v47 }
 0x15e   : > { %v1423_v39 = vadd.f32 %v1422_v38, %v1360_v52  ;;  %v1290_v61 = vadd.f32 %v1289_v37, %v2410_v27 }
 0x160   : > { %v1291_v42 = vadd.f32 %v2402_v14, %v1290_v61  ;;  %v1424_v46 = vadd.f32 %v1423_v39, %v1361_v40  ;;  %v1366_v14 = vmul.f32 %v2418_v44, %v2418_v44 }
 0x162   : > { %v1425_v48 = vadd.f32 %v1424_v46, %v1362_v49  ;;  %v1292_v51 = vadd.f32 %v2406_v21, %v1291_v42  ;;  %v1367_v21 = vmul.f32 %v2422_v55, %v2422_v55 }
 0x164   : > { %v1293_v43 = vadd.f32 %v1292_v51, %v2420_v47  ;;  %v1426_v53 = vadd.f32 %v1425_v48, %v1363_v57  ;;  %v1368_v47 = vmul.f32 %v2436_v18, %v2436_v18 }
 0x166   : > { %v1427_v56 = vadd.f32 %v1426_v53, %v1364_v16  ;;  %v1294_v27 = vadd.f32 %v1293_v43, %v2426_v60 }
 0x168   : > { %v1295_v50 = vadd.f32 %v2418_v44, %v1294_v27  ;;  %v1428_v63 = vadd.f32 %v1427_v56, %v1365_v59  ;;  %v1370_v44 = vmul.f32 %v2434_v15, %v2434_v15 }
 0x16a   : > { %v1429_v41 = vadd.f32 %v1428_v63, %v1366_v14  ;;  %v1296_v1 = vadd.f32 %v2422_v55, %v1295_v50  ;;  %v1371_v55 = vmul.f32 %v2438_v26, %v2438_v26 }
 0x16c   : > { %v1297_v2 = vadd.f32 %v1296_v1, %v2436_v18  ;;  %v1430_v45 = vadd.f32 %v1429_v41, %v1367_v21 }
 0x16e   : > { %v1431_v4 = vadd.f32 %v1430_v45, %v1368_v47  ;;  %v1298_v60 = vadd.f32 %v1297_v2, %v2442_v32 }
 0x170   : > { %v1299_v0 = vadd.f32 %v2434_v15, %v1298_v60  ;;  %v1432_v7 = vadd.f32 %v1431_v4, %v1369_v6  ;;  %v1373_v15 = vmul.f32 %v2458_v8, %v2458_v8 }
 0x172   : > { %v1433_v10 = vadd.f32 %v1432_v7, %v1370_v44  ;;  %v1300_v18 = vadd.f32 %v2438_v26, %v1299_v0  ;;  %v1375_v26 = vmul.f32 %v2454_v3, %v2454_v3 }
 0x174   : > { %v1301_v9 = vadd.f32 %v1300_v18, %v2452_v58  ;;  %v1434_v12 = vadd.f32 %v1433_v10, %v1371_v55 }
 0x176   : > { %v1435_v32 = vadd.f32 %v1434_v12, %v1372_v11  ;;  %v1302_v62 = vadd.f32 %v1301_v9, %v2458_v8 }
 0x178   : > { %v1303_v17 = vadd.f32 %v2450_v54, %v1302_v62  ;;  %v1436_v5 = vadd.f32 %v1435_v32, %v1373_v15 }
 0x17a   : > { %v1304_v19 = vadd.f32 %v2454_v3, %v1303_v17  ;;  %v1437_v58 = vadd.f32 %v1436_v5, %v1374_v13 }
 0x17c   : > { %v1305_v20 = vrot.slane %v1304_v19, 4  ;;  %v1438_v24 = vadd.f32 %v1437_v58, %v1375_v26 }
 0x17e   : > { %v1306_v23 = vadd.f32 %v1305_v20, %v1304_v19  ;;  %v1439_v25 = vrot.slane %v1438_v24, 4 }
 0x180   : > { %v1307_v28 = vrot.slane %v1306_v23, 2  ;;  %v1440_v33 = vadd.f32 %v1439_v25, %v1438_v24 }
 0x182   : > { %v1308_v8 = vadd.f32 %v1307_v28, %v1306_v23  ;;  %v1441_v30 = vrot.slane %v1440_v33, 2 }
 0x184   : > { %v1309_v22 = vrot.slane %v1308_v8, 1  ;;  %v1442_v31 = vadd.f32 %v1441_v30, %v1440_v33 }
 0x186   : > { %v1310_v54 = vadd.f32 %v1309_v22, %v1308_v8  ;;  %v1443_v34 = vrot.slane %v1442_v31, 1 }
 0x188   : > { %1311 = vst [vmem:[%s305_s25] sm:$0x1] %v1310_v54  ;;  %v1444_v3 = vadd.f32 %v1443_v34, %v1442_v31 }
 0x18a   : > { %1445 = vst [vmem:[%s311_s28] sm:$0x1] %v1444_v3 }
 0x18b PF: > { %s16_s20 = sadd.s32 1, %s2212_s20   ;;  %s2585_s18 = smov %s2208_s19 }
 0x18c   : > { %p13_p6 = scmp.ge.s32.totalorder %s16_s20, 4   ;;  %s2586_s19 = smov %s2588_s2 }
 0x18e   :  { %15 = sbr.rel (!%p13_p6) target bundleno = 2 (0x2), region = 92 }

// kernel: _lambda_.3
= control target key start
LH: loop header
LB: loop body
LE: loop exit
PB: predicated region body
PF: predicated region fallthrough
CT: control target
= control target key end

     0   :  { %s836_s12 = smov 0   ;;  %s1095_s0 = inlined_call_operand.vmem [shape: bf16[1024,128], index: 0, kind: input, shape index: {}]   ;;  %s1096_s1 = inlined_call_operand.vmem [shape: f32[1,128], index: 1, kind: input, shape index: {}]   ;;  %s1097_s2 = inlined_call_operand.vmem [shape: f32[1,128], index: 2, kind: input, shape index: {}]   ;;  %s1098_s3 = inlined_call_operand.vmem [shape: f32[1024,128], index: 3, kind: output, shape index: {}]  }
   0x1 LB: > { %s628_s13 = sadd.s32 4294967295, %s814_s12   ;;  %p632_p0 = scmp.ge.s32.totalorder %s814_s12, 1  ;;  %s814_s12 = sphi %s836_s12, %s13_s12  }
   0x2   : > { %p138_p1 = scmp.lt.s32.totalorder %s814_s12, 3 }
   0x4   : > { %p139_p2 = pnand %p632_p0, %p138_p1 }
   0x5   : > { %s633_s14 = sshll.u32 (!%p139_p2), %s628_s13, 6  ;;  %v855_v0 = vld [vmem:[%s1096_s1] ss:$0 sm:$0xff] (!%p139_p2) }
   0x6   : > { %142 = sbr.rel (%p139_p2) target bundleno = 85 (0x55), region = 32  ;;  %p163_p3 = scmp.lt.s32.totalorder (!%p139_p2), %s633_s14, 127  ;;  %v864_v9 = vld [vmem:[%s1097_s2] ss:$0 sm:$0xff] (!%p139_p2) }
   0xd   : > { %s1100_s14 = smov (!%p163_p3, %s633_s14), 127 }
   0xe   : > { %s634_s15 = sshll.u32 %s1100_s14, 2  ;;  %s636_s23 = sshll.u32 %s1100_s14, 3 }
   0xf   : > { %s850_s18 = scalar_lea.vmem %s1095_s0, %s634_s15  ;;  %s882_s26 = scalar_lea.vmem %s1098_s3, %s636_s23 }
  0x10   : > { %v642_v1 = vld [vmem:[%s850_s18] sm:$0xff]   ;;  %v769_v2 = vld [vmem:[%s850_s18 + $0x8] sm:$0xff]   ;;  %v770_v3 = vld [vmem:[%s850_s18 + $0x10] sm:$0xff]  }
  0x11   : > { %v643_v4 = vunpack.c.l.bf16 %v642_v1  ;;  %v644_v5 = vunpack.c.h.bf16 %v642_v1  ;;  %v647_v6 = vunpack.c.l.bf16 %v769_v2  ;;  %v648_v7 = vunpack.c.h.bf16 %v769_v2  ;;  %v771_v8 = vld [vmem:[%s850_s18 + $0x18] sm:$0xff]   ;;  %v772_v30 = vld [vmem:[%s850_s18 + $0x20] sm:$0xff]   ;;  %v773_v31 = vld [vmem:[%s850_s18 + $0x28] sm:$0xff]  }
  0x12   : > { %v651_v10 = vunpack.c.l.bf16 %v770_v3  ;;  %v652_v11 = vunpack.c.h.bf16 %v770_v3  ;;  %v655_v12 = vunpack.c.l.bf16 %v771_v8  ;;  %v656_v13 = vunpack.c.h.bf16 %v771_v8  ;;  %v774_v36 = vld [vmem:[%s850_s18 + $0x30] sm:$0xff]   ;;  %v775_v37 = vld [vmem:[%s850_s18 + $0x38] sm:$0xff]   ;;  %v776_v3 = vld [vmem:[%s850_s18 + $0x40] sm:$0xff]  }
  0x13   : > { %v309_v14 = vmul.f32 %v643_v4, %v855_v0  ;;  %v310_v15 = vmul.f32 %v644_v5, %v855_v0  ;;  %v311_v16 = vmul.f32 %v647_v6, %v855_v0  ;;  %v312_v17 = vmul.f32 %v648_v7, %v855_v0  ;;  %v777_v4 = vld [vmem:[%s850_s18 + $0x48] sm:$0xff]  }
  0x14   : > { %v313_v18 = vmul.f32 %v651_v10, %v855_v0  ;;  %v314_v19 = vmul.f32 %v652_v11, %v855_v0  ;;  %v315_v20 = vmul.f32 %v655_v12, %v855_v0  ;;  %v316_v21 = vmul.f32 %v656_v13, %v855_v0  ;;  %v778_v10 = vld [vmem:[%s850_s18 + $0x50] sm:$0xff]   ;;  %v779_v11 = vld [vmem:[%s850_s18 + $0x58] sm:$0xff]  }
  0x15   : > { %v380_v22 = vadd.f32 %v864_v9, %v309_v14  ;;  %v381_v23 = vadd.f32 %v864_v9, %v310_v15  ;;  %v382_v24 = vadd.f32 %v864_v9, %v311_v16  ;;  %v383_v25 = vadd.f32 %v864_v9, %v312_v17 }
  0x16   : > { %v384_v26 = vadd.f32 %v864_v9, %v313_v18  ;;  %v385_v27 = vadd.f32 %v864_v9, %v314_v19  ;;  %v386_v28 = vadd.f32 %v864_v9, %v315_v20  ;;  %v387_v29 = vadd.f32 %v864_v9, %v316_v21 }
  0x17   : > { %v444_v32 = vmax.f32 %v380_v22, 0.0  ;;  %v445_v33 = vmax.f32 %v381_v23, 0.0  ;;  %v446_v34 = vmax.f32 %v382_v24, 0.0  ;;  %v447_v35 = vmax.f32 %v383_v25, 0.0 }
  0x18   : > { %v448_v38 = vmax.f32 %v384_v26, 0.0  ;;  %v449_v39 = vmax.f32 %v385_v27, 0.0  ;;  %v450_v40 = vmax.f32 %v386_v28, 0.0  ;;  %v451_v41 = vmax.f32 %v387_v29, 0.0 }
  0x19   : > { %508 = vst [vmem:[%s882_s26] sm:$0xff] %v444_v32  ;;  %509 = vst [vmem:[%s882_s26 + $0x8] sm:$0xff] %v445_v33  ;;  %v659_v42 = vunpack.c.l.bf16 %v772_v30  ;;  %v660_v43 = vunpack.c.h.bf16 %v772_v30  ;;  %v663_v44 = vunpack.c.l.bf16 %v773_v31  ;;  %v664_v45 = vunpack.c.h.bf16 %v773_v31 }
  0x1a   : > { %510 = vst [vmem:[%s882_s26 + $0x10] sm:$0xff] %v446_v34  ;;  %511 = vst [vmem:[%s882_s26 + $0x18] sm:$0xff] %v447_v35  ;;  %v667_v46 = vunpack.c.l.bf16 %v774_v36  ;;  %v668_v47 = vunpack.c.h.bf16 %v774_v36  ;;  %v671_v48 = vunpack.c.l.bf16 %v775_v37  ;;  %v672_v49 = vunpack.c.h.bf16 %v775_v37 }
  0x1b   : > { %512 = vst [vmem:[%s882_s26 + $0x20] sm:$0xff] %v448_v38  ;;  %513 = vst [vmem:[%s882_s26 + $0x28] sm:$0xff] %v449_v39  ;;  %v317_v50 = vmul.f32 %v659_v42, %v855_v0  ;;  %v318_v51 = vmul.f32 %v660_v43, %v855_v0  ;;  %v319_v52 = vmul.f32 %v663_v44, %v855_v0  ;;  %v675_v16 = vunpack.c.l.bf16 %v776_v3 }
  0x1c   : > { %514 = vst [vmem:[%s882_s26 + $0x30] sm:$0xff] %v450_v40  ;;  %515 = vst [vmem:[%s882_s26 + $0x38] sm:$0xff] %v451_v41  ;;  %v320_v53 = vmul.f32 %v664_v45, %v855_v0  ;;  %v321_v54 = vmul.f32 %v667_v46, %v855_v0  ;;  %v322_v55 = vmul.f32 %v668_v47, %v855_v0  ;;  %v676_v17 = vunpack.c.h.bf16 %v776_v3  ;;  %v780_v40 = vld [vmem:[%s850_s18 + $0x60] sm:$0xff]   ;;  %v781_v41 = vld [vmem:[%s850_s18 + $0x68] sm:$0xff]  }
  0x1d   : > { %v323_v56 = vmul.f32 %v671_v48, %v855_v0  ;;  %v324_v57 = vmul.f32 %v672_v49, %v855_v0  ;;  %v388_v58 = vadd.f32 %v864_v9, %v317_v50  ;;  %v389_v59 = vadd.f32 %v864_v9, %v318_v51  ;;  %v782_v46 = vld [vmem:[%s850_s18 + $0x70] sm:$0xff]   ;;  %v783_v47 = vld [vmem:[%s850_s18 + $0x78] sm:$0xff]  }
  0x1e   : > { %v390_v60 = vadd.f32 %v864_v9, %v319_v52  ;;  %v391_v61 = vadd.f32 %v864_v9, %v320_v53  ;;  %v392_v62 = vadd.f32 %v864_v9, %v321_v54  ;;  %v393_v63 = vadd.f32 %v864_v9, %v322_v55 }
  0x1f   : > { %v394_v1 = vadd.f32 %v864_v9, %v323_v56  ;;  %v395_v2 = vadd.f32 %v864_v9, %v324_v57  ;;  %v452_v5 = vmax.f32 %v388_v58, 0.0  ;;  %v453_v6 = vmax.f32 %v389_v59, 0.0 }
  0x20   : > { %v454_v7 = vmax.f32 %v390_v60, 0.0  ;;  %v455_v8 = vmax.f32 %v391_v61, 0.0  ;;  %v456_v12 = vmax.f32 %v392_v62, 0.0  ;;  %v457_v13 = vmax.f32 %v393_v63, 0.0 }
  0x21   : > { %v458_v14 = vmax.f32 %v394_v1, 0.0  ;;  %v459_v15 = vmax.f32 %v395_v2, 0.0  ;;  %516 = vst [vmem:[%s882_s26 + $0x40] sm:$0xff] %v452_v5  ;;  %517 = vst [vmem:[%s882_s26 + $0x48] sm:$0xff] %v453_v6  ;;  %v679_v18 = vunpack.c.l.bf16 %v777_v4  ;;  %v680_v19 = vunpack.c.h.bf16 %v777_v4 }
  0x22   : > { %518 = vst [vmem:[%s882_s26 + $0x50] sm:$0xff] %v454_v7  ;;  %519 = vst [vmem:[%s882_s26 + $0x58] sm:$0xff] %v455_v8  ;;  %v683_v20 = vunpack.c.l.bf16 %v778_v10  ;;  %v684_v21 = vunpack.c.h.bf16 %v778_v10  ;;  %v687_v22 = vunpack.c.l.bf16 %v779_v11  ;;  %v688_v23 = vunpack.c.h.bf16 %v779_v11 }
  0x23   : > { %520 = vst [vmem:[%s882_s26 + $0x60] sm:$0xff] %v456_v12  ;;  %521 = vst [vmem:[%s882_s26 + $0x68] sm:$0xff] %v457_v13  ;;  %v325_v24 = vmul.f32 %v675_v16, %v855_v0  ;;  %v326_v25 = vmul.f32 %v676_v17, %v855_v0  ;;  %v327_v26 = vmul.f32 %v679_v18, %v855_v0  ;;  %v691_v52 = vunpack.c.l.bf16 %v780_v40 }
  0x24   : > { %522 = vst [vmem:[%s882_s26 + $0x70] sm:$0xff] %v458_v14  ;;  %523 = vst [vmem:[%s882_s26 + $0x78] sm:$0xff] %v459_v15  ;;  %v328_v27 = vmul.f32 %v680_v19, %v855_v0  ;;  %v329_v28 = vmul.f32 %v683_v20, %v855_v0  ;;  %v330_v29 = vmul.f32 %v684_v21, %v855_v0  ;;  %v692_v53 = vunpack.c.h.bf16 %v780_v40  ;;  %v784_v14 = vld [vmem:[%s850_s18 + $0x80] sm:$0xff]   ;;  %v785_v15 = vld [vmem:[%s850_s18 + $0x88] sm:$0xff]  }
  0x25   : > { %v331_v30 = vmul.f32 %v687_v22, %v855_v0  ;;  %v332_v31 = vmul.f32 %v688_v23, %v855_v0  ;;  %v396_v32 = vadd.f32 %v864_v9, %v325_v24  ;;  %v397_v33 = vadd.f32 %v864_v9, %v326_v25  ;;  %v786_v20 = vld [vmem:[%s850_s18 + $0x90] sm:$0xff]   ;;  %v787_v21 = vld [vmem:[%s850_s18 + $0x98] sm:$0xff]  }
  0x26   : > { %v398_v34 = vadd.f32 %v864_v9, %v327_v26  ;;  %v399_v35 = vadd.f32 %v864_v9, %v328_v27  ;;  %v400_v36 = vadd.f32 %v864_v9, %v329_v28  ;;  %v401_v37 = vadd.f32 %v864_v9, %v330_v29 }
  0x27   : > { %v402_v38 = vadd.f32 %v864_v9, %v331_v30  ;;  %v403_v39 = vadd.f32 %v864_v9, %v332_v31  ;;  %v460_v42 = vmax.f32 %v396_v32, 0.0  ;;  %v461_v43 = vmax.f32 %v397_v33, 0.0 }
  0x28   : > { %v462_v44 = vmax.f32 %v398_v34, 0.0  ;;  %v463_v45 = vmax.f32 %v399_v35, 0.0  ;;  %v464_v48 = vmax.f32 %v400_v36, 0.0  ;;  %v465_v49 = vmax.f32 %v401_v37, 0.0 }
  0x29   : > { %v466_v50 = vmax.f32 %v402_v38, 0.0  ;;  %v467_v51 = vmax.f32 %v403_v39, 0.0  ;;  %524 = vst [vmem:[%s882_s26 + $0x80] sm:$0xff] %v460_v42  ;;  %525 = vst [vmem:[%s882_s26 + $0x88] sm:$0xff] %v461_v43  ;;  %v695_v54 = vunpack.c.l.bf16 %v781_v41  ;;  %v696_v55 = vunpack.c.h.bf16 %v781_v41 }
  0x2a   : > { %526 = vst [vmem:[%s882_s26 + $0x90] sm:$0xff] %v462_v44  ;;  %527 = vst [vmem:[%s882_s26 + $0x98] sm:$0xff] %v463_v45  ;;  %v699_v56 = vunpack.c.l.bf16 %v782_v46  ;;  %v700_v57 = vunpack.c.h.bf16 %v782_v46  ;;  %v703_v58 = vunpack.c.l.bf16 %v783_v47  ;;  %v704_v59 = vunpack.c.h.bf16 %v783_v47 }
  0x2b   : > { %528 = vst [vmem:[%s882_s26 + $0xa0] sm:$0xff] %v464_v48  ;;  %529 = vst [vmem:[%s882_s26 + $0xa8] sm:$0xff] %v465_v49  ;;  %v333_v60 = vmul.f32 %v691_v52, %v855_v0  ;;  %v334_v61 = vmul.f32 %v692_v53, %v855_v0  ;;  %v335_v62 = vmul.f32 %v695_v54, %v855_v0  ;;  %v707_v26 = vunpack.c.l.bf16 %v784_v14 }
  0x2c   : > { %530 = vst [vmem:[%s882_s26 + $0xb0] sm:$0xff] %v466_v50  ;;  %531 = vst [vmem:[%s882_s26 + $0xb8] sm:$0xff] %v467_v51  ;;  %v336_v63 = vmul.f32 %v696_v55, %v855_v0  ;;  %v337_v1 = vmul.f32 %v699_v56, %v855_v0  ;;  %v338_v2 = vmul.f32 %v700_v57, %v855_v0  ;;  %v708_v27 = vunpack.c.h.bf16 %v784_v14  ;;  %v788_v50 = vld [vmem:[%s850_s18 + $0xa0] sm:$0xff]   ;;  %v789_v51 = vld [vmem:[%s850_s18 + $0xa8] sm:$0xff]  }
  0x2d   : > { %v339_v3 = vmul.f32 %v703_v58, %v855_v0  ;;  %v340_v4 = vmul.f32 %v704_v59, %v855_v0  ;;  %v404_v5 = vadd.f32 %v864_v9, %v333_v60  ;;  %v405_v6 = vadd.f32 %v864_v9, %v334_v61  ;;  %v790_v56 = vld [vmem:[%s850_s18 + $0xb0] sm:$0xff]   ;;  %v791_v57 = vld [vmem:[%s850_s18 + $0xb8] sm:$0xff]  }
  0x2e   : > { %v406_v7 = vadd.f32 %v864_v9, %v335_v62  ;;  %v407_v8 = vadd.f32 %v864_v9, %v336_v63  ;;  %v408_v10 = vadd.f32 %v864_v9, %v337_v1  ;;  %v409_v11 = vadd.f32 %v864_v9, %v338_v2 }
  0x2f   : > { %v410_v12 = vadd.f32 %v864_v9, %v339_v3  ;;  %v411_v13 = vadd.f32 %v864_v9, %v340_v4  ;;  %v468_v16 = vmax.f32 %v404_v5, 0.0  ;;  %v469_v17 = vmax.f32 %v405_v6, 0.0 }
  0x30   : > { %v470_v18 = vmax.f32 %v406_v7, 0.0  ;;  %v471_v19 = vmax.f32 %v407_v8, 0.0  ;;  %v472_v22 = vmax.f32 %v408_v10, 0.0  ;;  %v473_v23 = vmax.f32 %v409_v11, 0.0 }
  0x31   : > { %v474_v24 = vmax.f32 %v410_v12, 0.0  ;;  %v475_v25 = vmax.f32 %v411_v13, 0.0  ;;  %532 = vst [vmem:[%s882_s26 + $0xc0] sm:$0xff] %v468_v16  ;;  %533 = vst [vmem:[%s882_s26 + $0xc8] sm:$0xff] %v469_v17  ;;  %v711_v28 = vunpack.c.l.bf16 %v785_v15  ;;  %v712_v29 = vunpack.c.h.bf16 %v785_v15 }
  0x32   : > { %534 = vst [vmem:[%s882_s26 + $0xd0] sm:$0xff] %v470_v18  ;;  %535 = vst [vmem:[%s882_s26 + $0xd8] sm:$0xff] %v471_v19  ;;  %v715_v30 = vunpack.c.l.bf16 %v786_v20  ;;  %v716_v31 = vunpack.c.h.bf16 %v786_v20  ;;  %v719_v32 = vunpack.c.l.bf16 %v787_v21  ;;  %v720_v33 = vunpack.c.h.bf16 %v787_v21 }
  0x33   : > { %536 = vst [vmem:[%s882_s26 + $0xe0] sm:$0xff] %v472_v22  ;;  %537 = vst [vmem:[%s882_s26 + $0xe8] sm:$0xff] %v473_v23  ;;  %v341_v34 = vmul.f32 %v707_v26, %v855_v0  ;;  %v342_v35 = vmul.f32 %v708_v27, %v855_v0  ;;  %v343_v36 = vmul.f32 %v711_v28, %v855_v0  ;;  %v723_v62 = vunpack.c.l.bf16 %v788_v50 }
  0x34   : > { %538 = vst [vmem:[%s882_s26 + $0xf0] sm:$0xff] %v474_v24  ;;  %539 = vst [vmem:[%s882_s26 + $0xf8] sm:$0xff] %v475_v25  ;;  %v344_v37 = vmul.f32 %v712_v29, %v855_v0  ;;  %v345_v38 = vmul.f32 %v715_v30, %v855_v0  ;;  %v346_v39 = vmul.f32 %v716_v31, %v855_v0  ;;  %v724_v63 = vunpack.c.h.bf16 %v788_v50  ;;  %v792_v24 = vld [vmem:[%s850_s18 + $0xc0] sm:$0xff]   ;;  %v793_v25 = vld [vmem:[%s850_s18 + $0xc8] sm:$0xff]  }
  0x35   : > { %v347_v40 = vmul.f32 %v719_v32, %v855_v0  ;;  %v348_v41 = vmul.f32 %v720_v33, %v855_v0  ;;  %v412_v42 = vadd.f32 %v864_v9, %v341_v34  ;;  %v413_v43 = vadd.f32 %v864_v9, %v342_v35  ;;  %v794_v30 = vld [vmem:[%s850_s18 + $0xd0] sm:$0xff]   ;;  %v795_v31 = vld [vmem:[%s850_s18 + $0xd8] sm:$0xff]  }
  0x36   : > { %v414_v44 = vadd.f32 %v864_v9, %v343_v36  ;;  %v415_v45 = vadd.f32 %v864_v9, %v344_v37  ;;  %v416_v46 = vadd.f32 %v864_v9, %v345_v38  ;;  %v417_v47 = vadd.f32 %v864_v9, %v346_v39 }
  0x37   : > { %v418_v48 = vadd.f32 %v864_v9, %v347_v40  ;;  %v419_v49 = vadd.f32 %v864_v9, %v348_v41  ;;  %v476_v52 = vmax.f32 %v412_v42, 0.0  ;;  %v477_v53 = vmax.f32 %v413_v43, 0.0 }
  0x38   : > { %v478_v54 = vmax.f32 %v414_v44, 0.0  ;;  %v479_v55 = vmax.f32 %v415_v45, 0.0  ;;  %v480_v58 = vmax.f32 %v416_v46, 0.0  ;;  %v481_v59 = vmax.f32 %v417_v47, 0.0 }
  0x39   : > { %v482_v60 = vmax.f32 %v418_v48, 0.0  ;;  %v483_v61 = vmax.f32 %v419_v49, 0.0  ;;  %540 = vst [vmem:[%s882_s26 + $0x100] sm:$0xff] %v476_v52  ;;  %541 = vst [vmem:[%s882_s26 + $0x108] sm:$0xff] %v477_v53  ;;  %v727_v1 = vunpack.c.l.bf16 %v789_v51  ;;  %v728_v2 = vunpack.c.h.bf16 %v789_v51 }
  0x3a   : > { %542 = vst [vmem:[%s882_s26 + $0x110] sm:$0xff] %v478_v54  ;;  %543 = vst [vmem:[%s882_s26 + $0x118] sm:$0xff] %v479_v55  ;;  %v731_v3 = vunpack.c.l.bf16 %v790_v56  ;;  %v732_v4 = vunpack.c.h.bf16 %v790_v56  ;;  %v735_v5 = vunpack.c.l.bf16 %v791_v57  ;;  %v736_v6 = vunpack.c.h.bf16 %v791_v57 }
  0x3b   : > { %544 = vst [vmem:[%s882_s26 + $0x120] sm:$0xff] %v480_v58  ;;  %545 = vst [vmem:[%s882_s26 + $0x128] sm:$0xff] %v481_v59  ;;  %v349_v7 = vmul.f32 %v723_v62, %v855_v0  ;;  %v350_v8 = vmul.f32 %v724_v63, %v855_v0  ;;  %v351_v10 = vmul.f32 %v727_v1, %v855_v0  ;;  %v739_v36 = vunpack.c.l.bf16 %v792_v24 }
  0x3c   : > { %546 = vst [vmem:[%s882_s26 + $0x130] sm:$0xff] %v482_v60  ;;  %547 = vst [vmem:[%s882_s26 + $0x138] sm:$0xff] %v483_v61  ;;  %v352_v11 = vmul.f32 %v728_v2, %v855_v0  ;;  %v353_v12 = vmul.f32 %v731_v3, %v855_v0  ;;  %v354_v13 = vmul.f32 %v732_v4, %v855_v0  ;;  %v740_v37 = vunpack.c.h.bf16 %v792_v24  ;;  %v796_v60 = vld [vmem:[%s850_s18 + $0xe0] sm:$0xff]   ;;  %v797_v61 = vld [vmem:[%s850_s18 + $0xe8] sm:$0xff]  }
  0x3d   : > { %v355_v14 = vmul.f32 %v735_v5, %v855_v0  ;;  %v356_v15 = vmul.f32 %v736_v6, %v855_v0  ;;  %v420_v16 = vadd.f32 %v864_v9, %v349_v7  ;;  %v421_v17 = vadd.f32 %v864_v9, %v350_v8  ;;  %v798_v3 = vld [vmem:[%s850_s18 + $0xf0] sm:$0xff]   ;;  %v799_v4 = vld [vmem:[%s850_s18 + $0xf8] sm:$0xff]  }
  0x3e   : > { %v422_v18 = vadd.f32 %v864_v9, %v351_v10  ;;  %v423_v19 = vadd.f32 %v864_v9, %v352_v11  ;;  %v424_v20 = vadd.f32 %v864_v9, %v353_v12  ;;  %v425_v21 = vadd.f32 %v864_v9, %v354_v13 }
  0x3f   : > { %v426_v22 = vadd.f32 %v864_v9, %v355_v14  ;;  %v427_v23 = vadd.f32 %v864_v9, %v356_v15  ;;  %v484_v26 = vmax.f32 %v420_v16, 0.0  ;;  %v485_v27 = vmax.f32 %v421_v17, 0.0 }
  0x40   : > { %v486_v28 = vmax.f32 %v422_v18, 0.0  ;;  %v487_v29 = vmax.f32 %v423_v19, 0.0  ;;  %v488_v32 = vmax.f32 %v424_v20, 0.0  ;;  %v489_v33 = vmax.f32 %v425_v21, 0.0 }
  0x41   : > { %v490_v34 = vmax.f32 %v426_v22, 0.0  ;;  %v491_v35 = vmax.f32 %v427_v23, 0.0  ;;  %548 = vst [vmem:[%s882_s26 + $0x140] sm:$0xff] %v484_v26  ;;  %549 = vst [vmem:[%s882_s26 + $0x148] sm:$0xff] %v485_v27  ;;  %v743_v38 = vunpack.c.l.bf16 %v793_v25  ;;  %v744_v39 = vunpack.c.h.bf16 %v793_v25 }
  0x42   : > { %550 = vst [vmem:[%s882_s26 + $0x150] sm:$0xff] %v486_v28  ;;  %551 = vst [vmem:[%s882_s26 + $0x158] sm:$0xff] %v487_v29  ;;  %v747_v40 = vunpack.c.l.bf16 %v794_v30  ;;  %v748_v41 = vunpack.c.h.bf16 %v794_v30  ;;  %v751_v42 = vunpack.c.l.bf16 %v795_v31  ;;  %v752_v43 = vunpack.c.h.bf16 %v795_v31 }
  0x43   : > { %552 = vst [vmem:[%s882_s26 + $0x160] sm:$0xff] %v488_v32  ;;  %553 = vst [vmem:[%s882_s26 + $0x168] sm:$0xff] %v489_v33  ;;  %v357_v44 = vmul.f32 %v739_v36, %v855_v0  ;;  %v358_v45 = vmul.f32 %v740_v37, %v855_v0  ;;  %v359_v46 = vmul.f32 %v743_v38, %v855_v0  ;;  %v755_v10 = vunpack.c.l.bf16 %v796_v60 }
  0x44   : > { %554 = vst [vmem:[%s882_s26 + $0x170] sm:$0xff] %v490_v34  ;;  %555 = vst [vmem:[%s882_s26 + $0x178] sm:$0xff] %v491_v35  ;;  %v360_v47 = vmul.f32 %v744_v39, %v855_v0  ;;  %v361_v48 = vmul.f32 %v747_v40, %v855_v0  ;;  %v362_v49 = vmul.f32 %v748_v41, %v855_v0  ;;  %v756_v11 = vunpack.c.h.bf16 %v796_v60 }
  0x45   : > { %v363_v50 = vmul.f32 %v751_v42, %v855_v0  ;;  %v364_v51 = vmul.f32 %v752_v43, %v855_v0  ;;  %v428_v52 = vadd.f32 %v864_v9, %v357_v44  ;;  %v429_v53 = vadd.f32 %v864_v9, %v358_v45 }
  0x46   : > { %v430_v54 = vadd.f32 %v864_v9, %v359_v46  ;;  %v431_v55 = vadd.f32 %v864_v9, %v360_v47  ;;  %v432_v56 = vadd.f32 %v864_v9, %v361_v48  ;;  %v433_v57 = vadd.f32 %v864_v9, %v362_v49 }
  0x47   : > { %v434_v58 = vadd.f32 %v864_v9, %v363_v50  ;;  %v435_v59 = vadd.f32 %v864_v9, %v364_v51  ;;  %v492_v62 = vmax.f32 %v428_v52, 0.0  ;;  %v493_v63 = vmax.f32 %v429_v53, 0.0 }
  0x48   : > { %v494_v1 = vmax.f32 %v430_v54, 0.0  ;;  %v495_v2 = vmax.f32 %v431_v55, 0.0  ;;  %v496_v5 = vmax.f32 %v432_v56, 0.0  ;;  %v497_v6 = vmax.f32 %v433_v57, 0.0 }
  0x49   : > { %v498_v7 = vmax.f32 %v434_v58, 0.0  ;;  %v499_v8 = vmax.f32 %v435_v59, 0.0  ;;  %556 = vst [vmem:[%s882_s26 + $0x180] sm:$0xff] %v492_v62  ;;  %557 = vst [vmem:[%s882_s26 + $0x188] sm:$0xff] %v493_v63  ;;  %v759_v12 = vunpack.c.l.bf16 %v797_v61  ;;  %v760_v13 = vunpack.c.h.bf16 %v797_v61 }
  0x4a   : > { %558 = vst [vmem:[%s882_s26 + $0x190] sm:$0xff] %v494_v1  ;;  %559 = vst [vmem:[%s882_s26 + $0x198] sm:$0xff] %v495_v2  ;;  %v763_v14 = vunpack.c.l.bf16 %v798_v3  ;;  %v764_v15 = vunpack.c.h.bf16 %v798_v3  ;;  %v767_v16 = vunpack.c.l.bf16 %v799_v4  ;;  %v768_v17 = vunpack.c.h.bf16 %v799_v4 }
  0x4b   : > { %560 = vst [vmem:[%s882_s26 + $0x1a0] sm:$0xff] %v496_v5  ;;  %561 = vst [vmem:[%s882_s26 + $0x1a8] sm:$0xff] %v497_v6  ;;  %v365_v18 = vmul.f32 %v755_v10, %v855_v0  ;;  %v366_v19 = vmul.f32 %v756_v11, %v855_v0  ;;  %v367_v20 = vmul.f32 %v759_v12, %v855_v0 }
  0x4c   : > { %562 = vst [vmem:[%s882_s26 + $0x1b0] sm:$0xff] %v498_v7  ;;  %563 = vst [vmem:[%s882_s26 + $0x1b8] sm:$0xff] %v499_v8  ;;  %v368_v21 = vmul.f32 %v760_v13, %v855_v0  ;;  %v369_v22 = vmul.f32 %v763_v14, %v855_v0  ;;  %v370_v23 = vmul.f32 %v764_v15, %v855_v0 }
  0x4d   : > { %v371_v24 = vmul.f32 %v767_v16, %v855_v0  ;;  %v372_v25 = vmul.f32 %v768_v17, %v855_v0  ;;  %v436_v26 = vadd.f32 %v864_v9, %v365_v18  ;;  %v437_v27 = vadd.f32 %v864_v9, %v366_v19 }
  0x4e   : > { %v438_v28 = vadd.f32 %v864_v9, %v367_v20  ;;  %v439_v29 = vadd.f32 %v864_v9, %v368_v21  ;;  %v440_v30 = vadd.f32 %v864_v9, %v369_v22  ;;  %v441_v31 = vadd.f32 %v864_v9, %v370_v23 }
  0x4f   : > { %v442_v0 = vadd.f32 %v864_v9, %v371_v24  ;;  %v443_v32 = vadd.f32 %v864_v9, %v372_v25  ;;  %v500_v33 = vmax.f32 %v436_v26, 0.0  ;;  %v501_v34 = vmax.f32 %v437_v27, 0.0 }
  0x50   : > { %v502_v35 = vmax.f32 %v438_v28, 0.0  ;;  %v503_v36 = vmax.f32 %v439_v29, 0.0  ;;  %v504_v37 = vmax.f32 %v440_v30, 0.0  ;;  %v505_v38 = vmax.f32 %v441_v31, 0.0 }
  0x51   : > { %v506_v39 = vmax.f32 %v442_v0, 0.0  ;;  %v507_v40 = vmax.f32 %v443_v32, 0.0  ;;  %564 = vst [vmem:[%s882_s26 + $0x1c0] sm:$0xff] %v500_v33  ;;  %565 = vst [vmem:[%s882_s26 + $0x1c8] sm:$0xff] %v501_v34 }
  0x52   : > { %566 = vst [vmem:[%s882_s26 + $0x1d0] sm:$0xff] %v502_v35  ;;  %567 = vst [vmem:[%s882_s26 + $0x1d8] sm:$0xff] %v503_v36 }
  0x53   : > { %568 = vst [vmem:[%s882_s26 + $0x1e0] sm:$0xff] %v504_v37  ;;  %569 = vst [vmem:[%s882_s26 + $0x1e8] sm:$0xff] %v505_v38 }
  0x54   : > { %570 = vst [vmem:[%s882_s26 + $0x1f0] sm:$0xff] %v506_v39  ;;  %571 = vst [vmem:[%s882_s26 + $0x1f8] sm:$0xff] %v507_v40 }
  0x55 PF: > { %s13_s12 = sadd.s32 1, %s814_s12  }
  0x56   : > { %p10_p4 = scmp.ge.s32.totalorder %s13_s12, 4  }
  0x58   :  { %12 = sbr.rel (!%p10_p4) target bundleno = 1 (0x1), region = 62 }

</bundles_post_ra>
